<compile_context>
chip_gen: v6e
topology: v6e:2x2x1
jax: 0.10.0
libtpu: 0.0.40
codegen_flags: <defaults>
</compile_context>

<pallas_src>
import numpy as np
import jax
import jax.numpy as jnp
from jax.experimental import pallas as pl
from jax.experimental.pallas import tpu as pltpu


# ---------------------------------------------------------------------------
# Host-side helpers (interpolation / banded-conv operators, tiling heuristics)
# ---------------------------------------------------------------------------
def _round_up(x, m):
    return ((x + m - 1) // m) * m


def _bilinear_matrix(in_size: int, out_size: int) -> np.ndarray:
    """1-D interpolation matrix for Upsample(mode='bilinear', align_corners=True)."""
    out_idx = np.arange(out_size, dtype=np.float64)
    if out_size == 1:
        pos = np.zeros_like(out_idx)
    else:
        pos = out_idx * (in_size - 1) / (out_size - 1)
    i0 = np.clip(np.floor(pos).astype(np.int64), 0, in_size - 1)
    i1 = np.minimum(i0 + 1, in_size - 1)
    frac = (pos - i0).astype(np.float32)
    A = np.zeros((out_size, in_size), dtype=np.float32)
    A[np.arange(out_size), i0] += (1.0 - frac)
    A[np.arange(out_size), i1] += frac
    return A


def _row_interp_blocks(H: int, TH: int, R4p: int) -> np.ndarray:
    """Stacked per-tile row-interp blocks (T*R4p, H).

    Block t maps the H input rows to upsampled rows [t*TH-2, t*TH+TH+2); rows outside
    [0, 2H) and the sublane-rounding pad rows are zero, doubling as conv1's H padding.
    """
    H2 = 2 * H
    A = _bilinear_matrix(H, H2)
    T = H2 // TH
    out = np.zeros((T * R4p, H), np.float32)
    for t in range(T):
        for i in range(TH + 4):
            r = t * TH - 2 + i
            if 0 <= r < H2:
                out[t * R4p + i] = A[r]
    return out


def _col_interp_blockdiag(W: int, cin: int) -> np.ndarray:
    """Block-diagonal (over channels) column-interp matrix (Cin*W, Cin*(2W+4)).

    Per-channel block = A_w^T with 2 zero columns each side (conv1's zero padding in W).
    """
    W2 = 2 * W
    blk = np.zeros((W, W2 + 4), np.float32)
    blk[:, 2:W2 + 2] = _bilinear_matrix(W, W2).T
    M = np.zeros((cin * W, cin * (W2 + 4)), np.float32)
    for c in range(cin):
        M[c * W:(c + 1) * W, c * (W2 + 4):(c + 1) * (W2 + 4)] = blk
    return M


def _band_selector(n_in: int, n_out: int, zero_out_cols=()) -> np.ndarray:
    """sel[kw, qi, qo] = 1 where input col qi feeds output col qo through tap kw."""
    sel = np.zeros((3, n_in, n_out), np.float32)
    dead = set(zero_out_cols)
    for kw in range(3):
        for qo in range(n_out):
            if qo in dead:
                continue
            qi = qo + kw
            if 0 <= qi < n_in:
                sel[kw, qi, qo] = 1.0
    return sel


def _banded_weights(w_hwio, n_in, n_out, zero_out_cols=()):
    """Per-kh banded conv weights: (3, Cin*n_in, Cout*n_out).

    M[kh][ci*n_in + qi, co*n_out + qo] = w[kh, qi-qo, ci, co]  for 0 <= qi-qo <= 2,
    i.e. the kw shift + channel contraction of a 3x3 conv becomes ONE matmul per kh.
    """
    cin, cout = int(w_hwio.shape[2]), int(w_hwio.shape[3])
    sel = jnp.asarray(_band_selector(n_in, n_out, zero_out_cols))       # (3, n_in, n_out)
    M = jnp.einsum("hkio,kqp->hiqop", w_hwio, sel)                      # (3, ci, qi, co, qo)
    return M.reshape(3, cin * n_in, cout * n_out)


def _buf_bytes(rows, cols, itemsize=4, sublane=8):
    """VMEM footprint of a 2-D f32/bf16 buffer incl. sublane/lane layout padding."""
    return _round_up(max(int(rows), 1), sublane) * _round_up(max(int(cols), 1), 128) * itemsize


def _step_vmem_bytes(TH, H, W, cin, cout, wbytes):
    """Layout-padding-aware working-set estimate for one (batch, row-tile) grid step."""
    W2 = 2 * W
    R4p = _round_up(TH + 4, 8)
    R2, W2p, W2c = TH + 2, W2 + 4, W2 + 2
    k1, n1 = cin * W2p, cout * W2c
    n2 = cout * W2
    est = 0
    est += 2 * _buf_bytes(H, cin * W)                        # input block (double-buffered)
    est += 2 * _buf_bytes(R4p, H)                            # per-tile row-interp block
    est += 2 * _buf_bytes(cin * W, k1)                       # block-diag col interp
    est += 2 * 3 * _buf_bytes(k1, n1, wbytes)                # conv1 banded weights
    est += 2 * 3 * _buf_bytes(n1, n2, wbytes)                # conv2 banded weights
    est += 2 * cout * _buf_bytes(TH, W2)                     # NCHW output block (per-ch planes)
    est += 2 * (_buf_bytes(R4p, k1) + _buf_bytes(R2, n1) + _buf_bytes(TH, n2))   # u, h, y
    return est + (1 << 20)


def _vmem_capacity_bytes():
    try:
        return int(pltpu.get_tpu_info().vmem_capacity_bytes)   # 64 MiB v7x, 128 MiB v5e/v6e
    except Exception:
        return 64 * 1024 * 1024


def _pick_row_tile(N, H, W, cin, cout, wbytes, budget_bytes):
    """Largest row tile (multiple of 8 or == H2) whose working set fits the budget;
    prefer an even total grid-step count (v7x has 2 TensorCores) and >= 2 steps."""
    H2 = 2 * H
    cands = sorted({d for d in range(8, H2 + 1, 8) if H2 % d == 0} | {H2})
    fitting = [d for d in cands
               if _step_vmem_bytes(d, H, W, cin, cout, wbytes) <= budget_bytes]
    if not fitting:
        fitting = [cands[0]]
    steps = lambda d: N * (H2 // d)
    pref = [d for d in fitting if steps(d) >= 2 and steps(d) % 2 == 0]
    pool = pref if pref else fitting
    return max(pool)


# ---------------------------------------------------------------------------
# Fused Pallas kernel
# ---------------------------------------------------------------------------
def _make_fused_kernel(*, TH, H2, W2, cout, scale_after, matmul_dtype):
    R2 = TH + 2          # conv1 rows produced per tile (output rows + 1-row halo each side)
    f32 = jnp.float32

    def kernel(x_ref, ah_ref, awt_ref, m1_ref, b1_ref, m2_ref, b2_ref, o_ref):
        t = pl.program_id(1)

        # ---- separable 2x bilinear upsample: two channel-batched matmuls (f32) ---------
        ur = jnp.dot(ah_ref[...], x_ref[0].astype(f32), preferred_element_type=f32)
        u = jnp.dot(ur, awt_ref[...], preferred_element_type=f32)      # (R4p, Cin*W2p)
        u = u.astype(matmul_dtype)

        # ---- conv1: 3 accumulating banded matmuls (kw shifts + Cin folded into m1) -----
        h = jnp.dot(u[0:R2], m1_ref[0], preferred_element_type=f32)
        h = h + jnp.dot(u[1:R2 + 1], m1_ref[1], preferred_element_type=f32)
        h = h + jnp.dot(u[2:R2 + 2], m1_ref[2], preferred_element_type=f32)
        h = jnp.maximum(h + b1_ref[...], 0.0)                          # (R2, Cout*W2c)
        # rows outside the image are conv2's zero padding (bias + ReLU there is != 0)
        r_abs = t * TH - 1 + jax.lax.broadcasted_iota(jnp.int32, (R2, 1), 0)
        h = jnp.where((r_abs >= 0) & (r_abs < H2), h, 0.0).astype(matmul_dtype)

        # ---- conv2 (res_scale folded into m2/b2 when res_scale >= 0) -------------------
        y = jnp.dot(h[0:TH], m2_ref[0], preferred_element_type=f32)
        y = y + jnp.dot(h[1:TH + 1], m2_ref[1], preferred_element_type=f32)
        y = y + jnp.dot(h[2:TH + 2], m2_ref[2], preferred_element_type=f32)
        y = jnp.maximum(y + b2_ref[...], 0.0)                          # (TH, Cout*W2)
        if scale_after is not None:                                    # only res_scale < 0
            y = y * scale_after

        # ---- write the NCHW block directly: one (TH, W2) lane-slice per out channel ----
        for co in range(cout):
            o_ref[0, co, :, :] = y[:, co * W2:(co + 1) * W2].astype(o_ref.dtype)

    return kernel


# ---------------------------------------------------------------------------
# Public wrapper (PyTorch-style NCHW in / NCHW out)
# ---------------------------------------------------------------------------
def res_block_up(x_nchw, params, res_scale=1.0, matmul_dtype=None, row_tile=None):
    """Forward pass of ResBlockUp: (N, n_feats, H, W) -> (N, o_feats, 2H, 2W)."""
    N, Cin, H, W = x_nchw.shape
    H2, W2 = 2 * H, 2 * W
    W2p, W2c = W2 + 4, W2 + 2
    Cout = int(params["w1"].shape[-1])

    # bf16 conv matmuls (f32 accumulation) are the native MXU path on v5e/v6e/v7x.
    mdt = jnp.bfloat16 if matmul_dtype is None else matmul_dtype
    wbytes = jnp.dtype(mdt).itemsize

    cap = _vmem_capacity_bytes()
    budget = min(24 << 20, cap // 6)
    TH = row_tile if row_tile is not None else _pick_row_tile(N, H, W, Cin, Cout, wbytes, budget)
    assert H2 % TH == 0 and (TH % 8 == 0 or TH == H2)
    T = H2 // TH
    R4p = _round_up(TH + 4, 8)

    # upsample operators (kept f32: align_corners stays exact)
    ah = jnp.asarray(_row_interp_blocks(H, TH, R4p))          # (T*R4p, H)
    awt = jnp.asarray(_col_interp_blockdiag(W, Cin))          # (Cin*W, Cin*W2p)

    # fold res_scale into conv2 (ReLU commutes with non-negative scale)
    w2, b2 = params["w2"], params["b2"]
    if res_scale >= 0:
        w2 = w2 * res_scale
        b2 = b2 * res_scale
        scale_after = None
    else:
        scale_after = float(res_scale)

    # banded conv weights; conv2's W zero-padding lanes are baked into m1/b1
    m1 = _banded_weights(params["w1"], W2p, W2c,
                         zero_out_cols=(0, W2c - 1)).astype(mdt)    # (3, Cin*W2p, Cout*W2c)
    m2 = _banded_weights(w2, W2c, W2).astype(mdt)                   # (3, Cout*W2c, Cout*W2)

    col_mask = np.zeros((1, W2c), np.float32)
    col_mask[0, 1:W2c - 1] = 1.0
    b1_row = (params["b1"][:, None] * jnp.asarray(col_mask)).reshape(1, Cout * W2c)
    b2_row = jnp.broadcast_to(b2[:, None], (Cout, W2)).reshape(1, Cout * W2)

    # input as (N, H, Cin*W): H on sublanes, channel-major cols on lanes (matmul-ready,
    # lane-dense once Cin*W >= 128); small one-time transpose handled by XLA outside.
    x_r = jnp.transpose(x_nchw, (0, 2, 1, 3)).reshape(N, H, Cin * W)

    kernel = _make_fused_kernel(TH=TH, H2=H2, W2=W2, cout=Cout,
                                scale_after=scale_after, matmul_dtype=mdt)

    est = _step_vmem_bytes(TH, H, W, Cin, Cout, wbytes)
    vmem_limit = int(min(cap * 7 // 8,
                         max(min(96 << 20, cap // 2), 2 * est + (8 << 20))))

    out = pl.pallas_call(
        kernel,
        out_shape=jax.ShapeDtypeStruct((N, Cout, H2, W2), x_nchw.dtype),
        grid=(N, T),
        in_specs=[
            pl.BlockSpec((1, H, Cin * W), lambda n, t: (n, 0, 0)),            # input / batch
            pl.BlockSpec((R4p, H), lambda n, t: (t, 0)),                      # row interp / tile
            pl.BlockSpec((Cin * W, Cin * W2p), lambda n, t: (0, 0)),          # col interp
            pl.BlockSpec((3, Cin * W2p, Cout * W2c), lambda n, t: (0, 0, 0)), # conv1 bands
            pl.BlockSpec((1, Cout * W2c), lambda n, t: (0, 0)),               # conv1 bias row
            pl.BlockSpec((3, Cout * W2c, Cout * W2), lambda n, t: (0, 0, 0)), # conv2 bands
            pl.BlockSpec((1, Cout * W2), lambda n, t: (0, 0)),                # conv2 bias row
        ],
        out_specs=pl.BlockSpec((1, Cout, TH, W2), lambda n, t: (n, 0, t, 0)), # NCHW direct
        compiler_params=pltpu.CompilerParams(
            dimension_semantics=("parallel", "parallel"),
            vmem_limit_bytes=vmem_limit),
    )(x_r, ah, awt, m1, b1_row, m2, b2_row)

    return out


# ---------------------------------------------------------------------------
# Parameter init (PyTorch-Conv2d-like uniform fan-in bound) and pure-JAX reference
# ---------------------------------------------------------------------------
def init_params(key, n_feats, o_feats, kernel_size=3):
    k1, k2, k3, k4 = jax.random.split(key, 4)
    s1 = 1.0 / np.sqrt(n_feats * kernel_size * kernel_size)
    s2 = 1.0 / np.sqrt(o_feats * kernel_size * kernel_size)
    return {
        # weights stored HWIO (kh, kw, Cin, Cout)
        "w1": jax.random.uniform(k1, (kernel_size, kernel_size, n_feats, o_feats),
                                 jnp.float32, -s1, s1),
        "b1": jax.random.uniform(k2, (o_feats,), jnp.float32, -s1, s1),
        "w2": jax.random.uniform(k3, (kernel_size, kernel_size, o_feats, o_feats),
                                 jnp.float32, -s2, s2),
        "b2": jax.random.uniform(k4, (o_feats,), jnp.float32, -s2, s2),
    }


def _reference(x_nchw, params, res_scale):
    """Plain-JAX reference of the PyTorch forward (for self-checking)."""
    N, C, H, W = x_nchw.shape
    Ah = jnp.asarray(_bilinear_matrix(H, 2 * H))
    Aw = jnp.asarray(_bilinear_matrix(W, 2 * W))
    up = jnp.einsum("nchw,ph,qw->ncpq", x_nchw, Ah, Aw,
                    precision=jax.lax.Precision.HIGHEST)

    def conv(z, w_hwio, b):
        out = jax.lax.conv_general_dilated(
            z, w_hwio, window_strides=(1, 1), padding="SAME",
            dimension_numbers=("NCHW", "HWIO", "NCHW"),
            precision=jax.lax.Precision.HIGHEST)
        return jax.nn.relu(out + b[None, :, None, None])

    y = conv(up, params["w1"], params["b1"])
    y = conv(y, params["w2"], params["b2"])
    return y * res_scale


if __name__ == "__main__":
    key = jax.random.PRNGKey(0)
    kx, kp = jax.random.split(key)

    N, n_feats, H, W = 2, 4, 16, 16
    o_feats = 8
    res_scale = 0.5

    x = jax.random.normal(kx, (N, n_feats, H, W), jnp.float32)
    params = init_params(kp, n_feats, o_feats, kernel_size=3)

    ref = jax.block_until_ready(_reference(x, params, res_scale))

    # f32 conv matmuls: close to the PyTorch-style f32 reference
    out32 = jax.block_until_ready(
        res_block_up(x, params, res_scale, matmul_dtype=jnp.float32))
    assert out32.shape == (N, o_feats, 2 * H, 2 * W), out32.shape
    assert bool(jnp.all(jnp.isfinite(out32)))
    err32 = float(jnp.max(jnp.abs(out32 - ref)))
    assert err32 < 1e-2, f"f32 max abs err vs reference: {err32}"

    # default path: bf16 conv matmuls / bf16 banded weights (f32 accumulation)
    out_bf = jax.block_until_ready(res_block_up(x, params, res_scale))
    assert out_bf.shape == (N, o_feats, 2 * H, 2 * W), out_bf.shape
    assert bool(jnp.all(jnp.isfinite(out_bf)))
    errbf = float(jnp.max(jnp.abs(out_bf - ref)))
    assert errbf < 1e-1, f"bf16 max abs err vs reference: {errbf}"

    print("KERNEL_OK")
</pallas_src>

<mosaic_0001>
module attributes {stable_mosaic.version = 11 : i64} {
  func.func @kernel(%arg0: i32, %arg1: i32, %arg2: memref<1x16x64xf32, #tpu.memory_space<vmem>>, %arg3: memref<40x16xf32, #tpu.memory_space<vmem>>, %arg4: memref<64x144xf32, #tpu.memory_space<vmem>>, %arg5: memref<3x144x272xf32, #tpu.memory_space<vmem>>, %arg6: memref<1x272xf32, #tpu.memory_space<vmem>>, %arg7: memref<3x272x256xf32, #tpu.memory_space<vmem>>, %arg8: memref<1x256xf32, #tpu.memory_space<vmem>>, %arg9: memref<1x8x32x32xf32, #tpu.memory_space<vmem>>) attributes {dimension_semantics = [#tpu.dimension_semantics<parallel>, #tpu.dimension_semantics<parallel>], iteration_bounds = array<i64: 2, 1>, scalar_prefetch = 0 : i64, scratch_operands = 0 : i64, tpu.core_type = #tpu.core_type<tc>, window_params = [{transform_indices = @transform_0, window_bounds = array<i64: 1, 16, 64>}, {transform_indices = @transform_1, window_bounds = array<i64: 40, 16>}, {pipeline_mode = #tpu.pipeline_mode<synchronous>, transform_indices = @transform_2, window_bounds = array<i64: 64, 144>}, {pipeline_mode = #tpu.pipeline_mode<synchronous>, transform_indices = @transform_3, window_bounds = array<i64: 3, 144, 272>}, {pipeline_mode = #tpu.pipeline_mode<synchronous>, transform_indices = @transform_4, window_bounds = array<i64: 1, 272>}, {pipeline_mode = #tpu.pipeline_mode<synchronous>, transform_indices = @transform_5, window_bounds = array<i64: 3, 272, 256>}, {pipeline_mode = #tpu.pipeline_mode<synchronous>, transform_indices = @transform_6, window_bounds = array<i64: 1, 256>}, {transform_indices = @transform_7, window_bounds = array<i64: 1, 8, 32, 32>}]} {
    %c0 = arith.constant 0 : index
    %c0_0 = arith.constant 0 : index
    %0 = vector.load %arg3[%c0, %c0_0] : memref<40x16xf32, #tpu.memory_space<vmem>>, vector<40x16xf32>
    %c0_1 = arith.constant 0 : index
    %c0_2 = arith.constant 0 : index
    %c0_3 = arith.constant 0 : index
    %1 = vector.load %arg2[%c0_1, %c0_2, %c0_3] : memref<1x16x64xf32, #tpu.memory_space<vmem>>, vector<1x16x64xf32>
    %2 = vector.shape_cast %1 : vector<1x16x64xf32> to vector<16x64xf32>
    %cst = arith.constant dense<0.000000e+00> : vector<40x64xf32>
    %3 = tpu.matmul %0, %2, %cst {dimension_numbers = #tpu.dot_dimension_numbers<[1], [0], [0], [1], [0, 0, 1, 1], [], []>} : vector<40x16xf32>, vector<16x64xf32>, vector<40x64xf32> -> vector<40x64xf32>
    %c0_4 = arith.constant 0 : index
    %c0_5 = arith.constant 0 : index
    %4 = vector.load %arg4[%c0_4, %c0_5] : memref<64x144xf32, #tpu.memory_space<vmem>>, vector<64x144xf32>
    %cst_6 = arith.constant dense<0.000000e+00> : vector<40x144xf32>
    %5 = tpu.matmul %3, %4, %cst_6 {dimension_numbers = #tpu.dot_dimension_numbers<[1], [0], [0], [1], [0, 0, 1, 1], [], []>} : vector<40x64xf32>, vector<64x144xf32>, vector<40x144xf32> -> vector<40x144xf32>
    %6 = vector.extract_strided_slice %5 {offsets = [0, 0], sizes = [34, 144], strides = [1, 1]} : vector<40x144xf32> to vector<34x144xf32>
    %c0_7 = arith.constant 0 : index
    %c0_8 = arith.constant 0 : index
    %c0_9 = arith.constant 0 : index
    %7 = vector.load %arg5[%c0_7, %c0_8, %c0_9] : memref<3x144x272xf32, #tpu.memory_space<vmem>>, vector<1x144x272xf32>
    %8 = vector.shape_cast %7 : vector<1x144x272xf32> to vector<144x272xf32>
    %cst_10 = arith.constant dense<0.000000e+00> : vector<34x272xf32>
    %9 = tpu.matmul %6, %8, %cst_10 {dimension_numbers = #tpu.dot_dimension_numbers<[1], [0], [0], [1], [0, 0, 1, 1], [], []>} : vector<34x144xf32>, vector<144x272xf32>, vector<34x272xf32> -> vector<34x272xf32>
    %10 = vector.extract_strided_slice %5 {offsets = [1, 0], sizes = [34, 144], strides = [1, 1]} : vector<40x144xf32> to vector<34x144xf32>
    %c1 = arith.constant 1 : index
    %c0_11 = arith.constant 0 : index
    %c0_12 = arith.constant 0 : index
    %11 = vector.load %arg5[%c1, %c0_11, %c0_12] : memref<3x144x272xf32, #tpu.memory_space<vmem>>, vector<1x144x272xf32>
    %12 = vector.shape_cast %11 : vector<1x144x272xf32> to vector<144x272xf32>
    %cst_13 = arith.constant dense<0.000000e+00> : vector<34x272xf32>
    %13 = tpu.matmul %10, %12, %cst_13 {dimension_numbers = #tpu.dot_dimension_numbers<[1], [0], [0], [1], [0, 0, 1, 1], [], []>} : vector<34x144xf32>, vector<144x272xf32>, vector<34x272xf32> -> vector<34x272xf32>
    %14 = arith.addf %9, %13 : vector<34x272xf32>
    %15 = vector.extract_strided_slice %5 {offsets = [2, 0], sizes = [34, 144], strides = [1, 1]} : vector<40x144xf32> to vector<34x144xf32>
    %c2 = arith.constant 2 : index
    %c0_14 = arith.constant 0 : index
    %c0_15 = arith.constant 0 : index
    %16 = vector.load %arg5[%c2, %c0_14, %c0_15] : memref<3x144x272xf32, #tpu.memory_space<vmem>>, vector<1x144x272xf32>
    %17 = vector.shape_cast %16 : vector<1x144x272xf32> to vector<144x272xf32>
    %cst_16 = arith.constant dense<0.000000e+00> : vector<34x272xf32>
    %18 = tpu.matmul %15, %17, %cst_16 {dimension_numbers = #tpu.dot_dimension_numbers<[1], [0], [0], [1], [0, 0, 1, 1], [], []>} : vector<34x144xf32>, vector<144x272xf32>, vector<34x272xf32> -> vector<34x272xf32>
    %19 = arith.addf %14, %18 : vector<34x272xf32>
    %c0_17 = arith.constant 0 : index
    %c0_18 = arith.constant 0 : index
    %20 = vector.load %arg6[%c0_17, %c0_18] : memref<1x272xf32, #tpu.memory_space<vmem>>, vector<1x272xf32>
    %21 = vector.broadcast %20 : vector<1x272xf32> to vector<34x272xf32>
    %22 = arith.addf %19, %21 : vector<34x272xf32>
    %cst_19 = arith.constant 0.000000e+00 : f32
    %23 = vector.broadcast %cst_19 : f32 to vector<34x272xf32>
    %24 = arith.maximumf %22, %23 : vector<34x272xf32>
    %c32_i32 = arith.constant 32 : i32
    %25 = arith.muli %arg1, %c32_i32 : i32
    %c1_i32 = arith.constant 1 : i32
    %26 = arith.subi %25, %c1_i32 : i32
    %27 = tpu.iota {dimensions = array<i32: 0>} : vector<34x1xi32>
    %28 = vector.broadcast %26 : i32 to vector<34x1xi32>
    %29 = arith.addi %28, %27 : vector<34x1xi32>
    %c0_i32 = arith.constant 0 : i32
    %30 = vector.broadcast %c0_i32 : i32 to vector<34x1xi32>
    %31 = arith.cmpi sge, %29, %30 : vector<34x1xi32>
    %c32_i32_20 = arith.constant 32 : i32
    %32 = vector.broadcast %c32_i32_20 : i32 to vector<34x1xi32>
    %33 = arith.cmpi slt, %29, %32 : vector<34x1xi32>
    %34 = arith.andi %31, %33 : vector<34x1xi1>
    %cst_21 = arith.constant 0.000000e+00 : f32
    %35 = vector.shape_cast %34 : vector<34x1xi1> to vector<34x1xi1>
    %36 = vector.broadcast %35 : vector<34x1xi1> to vector<34x272xi1>
    %37 = vector.broadcast %cst_21 : f32 to vector<34x272xf32>
    %38 = arith.select %36, %24, %37 : vector<34x272xi1>, vector<34x272xf32>
    %39 = vector.extract_strided_slice %38 {offsets = [0, 0], sizes = [32, 272], strides = [1, 1]} : vector<34x272xf32> to vector<32x272xf32>
    %c0_22 = arith.constant 0 : index
    %c0_23 = arith.constant 0 : index
    %c0_24 = arith.constant 0 : index
    %40 = vector.load %arg7[%c0_22, %c0_23, %c0_24] : memref<3x272x256xf32, #tpu.memory_space<vmem>>, vector<1x272x256xf32>
    %41 = vector.shape_cast %40 : vector<1x272x256xf32> to vector<272x256xf32>
    %cst_25 = arith.constant dense<0.000000e+00> : vector<32x256xf32>
    %42 = tpu.matmul %39, %41, %cst_25 {dimension_numbers = #tpu.dot_dimension_numbers<[1], [0], [0], [1], [0, 0, 1, 1], [], []>} : vector<32x272xf32>, vector<272x256xf32>, vector<32x256xf32> -> vector<32x256xf32>
    %43 = vector.extract_strided_slice %38 {offsets = [1, 0], sizes = [32, 272], strides = [1, 1]} : vector<34x272xf32> to vector<32x272xf32>
    %c1_26 = arith.constant 1 : index
    %c0_27 = arith.constant 0 : index
    %c0_28 = arith.constant 0 : index
    %44 = vector.load %arg7[%c1_26, %c0_27, %c0_28] : memref<3x272x256xf32, #tpu.memory_space<vmem>>, vector<1x272x256xf32>
    %45 = vector.shape_cast %44 : vector<1x272x256xf32> to vector<272x256xf32>
    %cst_29 = arith.constant dense<0.000000e+00> : vector<32x256xf32>
    %46 = tpu.matmul %43, %45, %cst_29 {dimension_numbers = #tpu.dot_dimension_numbers<[1], [0], [0], [1], [0, 0, 1, 1], [], []>} : vector<32x272xf32>, vector<272x256xf32>, vector<32x256xf32> -> vector<32x256xf32>
    %47 = arith.addf %42, %46 : vector<32x256xf32>
    %48 = vector.extract_strided_slice %38 {offsets = [2, 0], sizes = [32, 272], strides = [1, 1]} : vector<34x272xf32> to vector<32x272xf32>
    %c2_30 = arith.constant 2 : index
    %c0_31 = arith.constant 0 : index
    %c0_32 = arith.constant 0 : index
    %49 = vector.load %arg7[%c2_30, %c0_31, %c0_32] : memref<3x272x256xf32, #tpu.memory_space<vmem>>, vector<1x272x256xf32>
    %50 = vector.shape_cast %49 : vector<1x272x256xf32> to vector<272x256xf32>
    %cst_33 = arith.constant dense<0.000000e+00> : vector<32x256xf32>
    %51 = tpu.matmul %48, %50, %cst_33 {dimension_numbers = #tpu.dot_dimension_numbers<[1], [0], [0], [1], [0, 0, 1, 1], [], []>} : vector<32x272xf32>, vector<272x256xf32>, vector<32x256xf32> -> vector<32x256xf32>
    %52 = arith.addf %47, %51 : vector<32x256xf32>
    %c0_34 = arith.constant 0 : index
    %c0_35 = arith.constant 0 : index
    %53 = vector.load %arg8[%c0_34, %c0_35] : memref<1x256xf32, #tpu.memory_space<vmem>>, vector<1x256xf32>
    %54 = vector.broadcast %53 : vector<1x256xf32> to vector<32x256xf32>
    %55 = arith.addf %52, %54 : vector<32x256xf32>
    %cst_36 = arith.constant 0.000000e+00 : f32
    %56 = vector.broadcast %cst_36 : f32 to vector<32x256xf32>
    %57 = arith.maximumf %55, %56 : vector<32x256xf32>
    %58 = vector.extract_strided_slice %57 {offsets = [0, 0], sizes = [32, 32], strides = [1, 1]} : vector<32x256xf32> to vector<32x32xf32>
    %c0_37 = arith.constant 0 : index
    %c0_38 = arith.constant 0 : index
    %c0_39 = arith.constant 0 : index
    %c0_40 = arith.constant 0 : index
    %59 = vector.load %arg9[%c0_37, %c0_38, %c0_39, %c0_40] : memref<1x8x32x32xf32, #tpu.memory_space<vmem>>, vector<1x1x32x32xf32>
    %60 = vector.shape_cast %59 : vector<1x1x32x32xf32> to vector<32x32xf32>
    %61 = vector.shape_cast %58 : vector<32x32xf32> to vector<1x1x32x32xf32>
    tpu.vector_store %arg9[%c0_37, %c0_38, %c0_39, %c0_40], %61 {strides = array<i32>} : memref<1x8x32x32xf32, #tpu.memory_space<vmem>>, vector<1x1x32x32xf32>,
    %62 = vector.extract_strided_slice %57 {offsets = [0, 32], sizes = [32, 32], strides = [1, 1]} : vector<32x256xf32> to vector<32x32xf32>
    %c0_41 = arith.constant 0 : index
    %c1_42 = arith.constant 1 : index
    %c0_43 = arith.constant 0 : index
    %c0_44 = arith.constant 0 : index
    %63 = vector.load %arg9[%c0_41, %c1_42, %c0_43, %c0_44] : memref<1x8x32x32xf32, #tpu.memory_space<vmem>>, vector<1x1x32x32xf32>
    %64 = vector.shape_cast %63 : vector<1x1x32x32xf32> to vector<32x32xf32>
    %65 = vector.shape_cast %62 : vector<32x32xf32> to vector<1x1x32x32xf32>
    tpu.vector_store %arg9[%c0_41, %c1_42, %c0_43, %c0_44], %65 {strides = array<i32>} : memref<1x8x32x32xf32, #tpu.memory_space<vmem>>, vector<1x1x32x32xf32>,
    %66 = vector.extract_strided_slice %57 {offsets = [0, 64], sizes = [32, 32], strides = [1, 1]} : vector<32x256xf32> to vector<32x32xf32>
    %c0_45 = arith.constant 0 : index
    %c2_46 = arith.constant 2 : index
    %c0_47 = arith.constant 0 : index
    %c0_48 = arith.constant 0 : index
    %67 = vector.load %arg9[%c0_45, %c2_46, %c0_47, %c0_48] : memref<1x8x32x32xf32, #tpu.memory_space<vmem>>, vector<1x1x32x32xf32>
    %68 = vector.shape_cast %67 : vector<1x1x32x32xf32> to vector<32x32xf32>
    %69 = vector.shape_cast %66 : vector<32x32xf32> to vector<1x1x32x32xf32>
    tpu.vector_store %arg9[%c0_45, %c2_46, %c0_47, %c0_48], %69 {strides = array<i32>} : memref<1x8x32x32xf32, #tpu.memory_space<vmem>>, vector<1x1x32x32xf32>,
    %70 = vector.extract_strided_slice %57 {offsets = [0, 96], sizes = [32, 32], strides = [1, 1]} : vector<32x256xf32> to vector<32x32xf32>
    %c0_49 = arith.constant 0 : index
    %c3 = arith.constant 3 : index
    %c0_50 = arith.constant 0 : index
    %c0_51 = arith.constant 0 : index
    %71 = vector.load %arg9[%c0_49, %c3, %c0_50, %c0_51] : memref<1x8x32x32xf32, #tpu.memory_space<vmem>>, vector<1x1x32x32xf32>
    %72 = vector.shape_cast %71 : vector<1x1x32x32xf32> to vector<32x32xf32>
    %73 = vector.shape_cast %70 : vector<32x32xf32> to vector<1x1x32x32xf32>
    tpu.vector_store %arg9[%c0_49, %c3, %c0_50, %c0_51], %73 {strides = array<i32>} : memref<1x8x32x32xf32, #tpu.memory_space<vmem>>, vector<1x1x32x32xf32>,
    %74 = vector.extract_strided_slice %57 {offsets = [0, 128], sizes = [32, 32], strides = [1, 1]} : vector<32x256xf32> to vector<32x32xf32>
    %c0_52 = arith.constant 0 : index
    %c4 = arith.constant 4 : index
    %c0_53 = arith.constant 0 : index
    %c0_54 = arith.constant 0 : index
    %75 = vector.load %arg9[%c0_52, %c4, %c0_53, %c0_54] : memref<1x8x32x32xf32, #tpu.memory_space<vmem>>, vector<1x1x32x32xf32>
    %76 = vector.shape_cast %75 : vector<1x1x32x32xf32> to vector<32x32xf32>
    %77 = vector.shape_cast %74 : vector<32x32xf32> to vector<1x1x32x32xf32>
    tpu.vector_store %arg9[%c0_52, %c4, %c0_53, %c0_54], %77 {strides = array<i32>} : memref<1x8x32x32xf32, #tpu.memory_space<vmem>>, vector<1x1x32x32xf32>,
    %78 = vector.extract_strided_slice %57 {offsets = [0, 160], sizes = [32, 32], strides = [1, 1]} : vector<32x256xf32> to vector<32x32xf32>
    %c0_55 = arith.constant 0 : index
    %c5 = arith.constant 5 : index
    %c0_56 = arith.constant 0 : index
    %c0_57 = arith.constant 0 : index
    %79 = vector.load %arg9[%c0_55, %c5, %c0_56, %c0_57] : memref<1x8x32x32xf32, #tpu.memory_space<vmem>>, vector<1x1x32x32xf32>
    %80 = vector.shape_cast %79 : vector<1x1x32x32xf32> to vector<32x32xf32>
    %81 = vector.shape_cast %78 : vector<32x32xf32> to vector<1x1x32x32xf32>
    tpu.vector_store %arg9[%c0_55, %c5, %c0_56, %c0_57], %81 {strides = array<i32>} : memref<1x8x32x32xf32, #tpu.memory_space<vmem>>, vector<1x1x32x32xf32>,
    %82 = vector.extract_strided_slice %57 {offsets = [0, 192], sizes = [32, 32], strides = [1, 1]} : vector<32x256xf32> to vector<32x32xf32>
    %c0_58 = arith.constant 0 : index
    %c6 = arith.constant 6 : index
    %c0_59 = arith.constant 0 : index
    %c0_60 = arith.constant 0 : index
    %83 = vector.load %arg9[%c0_58, %c6, %c0_59, %c0_60] : memref<1x8x32x32xf32, #tpu.memory_space<vmem>>, vector<1x1x32x32xf32>
    %84 = vector.shape_cast %83 : vector<1x1x32x32xf32> to vector<32x32xf32>
    %85 = vector.shape_cast %82 : vector<32x32xf32> to vector<1x1x32x32xf32>
    tpu.vector_store %arg9[%c0_58, %c6, %c0_59, %c0_60], %85 {strides = array<i32>} : memref<1x8x32x32xf32, #tpu.memory_space<vmem>>, vector<1x1x32x32xf32>,
    %86 = vector.extract_strided_slice %57 {offsets = [0, 224], sizes = [32, 32], strides = [1, 1]} : vector<32x256xf32> to vector<32x32xf32>
    %c0_61 = arith.constant 0 : index
    %c7 = arith.constant 7 : index
    %c0_62 = arith.constant 0 : index
    %c0_63 = arith.constant 0 : index
    %87 = vector.load %arg9[%c0_61, %c7, %c0_62, %c0_63] : memref<1x8x32x32xf32, #tpu.memory_space<vmem>>, vector<1x1x32x32xf32>
    %88 = vector.shape_cast %87 : vector<1x1x32x32xf32> to vector<32x32xf32>
    %89 = vector.shape_cast %86 : vector<32x32xf32> to vector<1x1x32x32xf32>
    tpu.vector_store %arg9[%c0_61, %c7, %c0_62, %c0_63], %89 {strides = array<i32>} : memref<1x8x32x32xf32, #tpu.memory_space<vmem>>, vector<1x1x32x32xf32>,
    return
  }
  func.func @transform_0(%arg0: i32, %arg1: i32) -> (i32, i32, i32) {
    %c0_i32 = arith.constant 0 : i32
    %c0_i32_0 = arith.constant 0 : i32
    %c0_i32_1 = arith.constant 0 : i32
    return %arg0, %c0_i32, %c0_i32_0 : i32, i32, i32
  }
  func.func @transform_1(%arg0: i32, %arg1: i32) -> (i32, i32) {
    %c0_i32 = arith.constant 0 : i32
    %c0_i32_0 = arith.constant 0 : i32
    return %arg1, %c0_i32 : i32, i32
  }
  func.func @transform_2(%arg0: i32, %arg1: i32) -> (i32, i32) {
    %c0_i32 = arith.constant 0 : i32
    %c0_i32_0 = arith.constant 0 : i32
    %c0_i32_1 = arith.constant 0 : i32
    return %c0_i32, %c0_i32_0 : i32, i32
  }
  func.func @transform_3(%arg0: i32, %arg1: i32) -> (i32, i32, i32) {
    %c0_i32 = arith.constant 0 : i32
    %c0_i32_0 = arith.constant 0 : i32
    %c0_i32_1 = arith.constant 0 : i32
    %c0_i32_2 = arith.constant 0 : i32
    return %c0_i32, %c0_i32_0, %c0_i32_1 : i32, i32, i32
  }
  func.func @transform_4(%arg0: i32, %arg1: i32) -> (i32, i32) {
    %c0_i32 = arith.constant 0 : i32
    %c0_i32_0 = arith.constant 0 : i32
    %c0_i32_1 = arith.constant 0 : i32
    return %c0_i32, %c0_i32_0 : i32, i32
  }
  func.func @transform_5(%arg0: i32, %arg1: i32) -> (i32, i32, i32) {
    %c0_i32 = arith.constant 0 : i32
    %c0_i32_0 = arith.constant 0 : i32
    %c0_i32_1 = arith.constant 0 : i32
    %c0_i32_2 = arith.constant 0 : i32
    return %c0_i32, %c0_i32_0, %c0_i32_1 : i32, i32, i32
  }
  func.func @transform_6(%arg0: i32, %arg1: i32) -> (i32, i32) {
    %c0_i32 = arith.constant 0 : i32
    %c0_i32_0 = arith.constant 0 : i32
    %c0_i32_1 = arith.constant 0 : i32
    return %c0_i32, %c0_i32_0 : i32, i32
  }
  func.func @transform_7(%arg0: i32, %arg1: i32) -> (i32, i32, i32, i32) {
    %c0_i32 = arith.constant 0 : i32
    %c0_i32_0 = arith.constant 0 : i32
    %c0_i32_1 = arith.constant 0 : i32
    return %arg0, %c0_i32, %arg1, %c0_i32_0 : i32, i32, i32, i32
  }
}

</mosaic_0001>

<bundles_post_ra>
// kernel: tpu_custom_call.1
= control target key start
LH: loop header
LB: loop body
LE: loop exit
PB: predicated region body
PF: predicated region fallthrough
CT: control target
= control target key end

     0   :  { %12 = vsyncpa [#allocation3], 0  ;;  %s3861_s0 = inlined_call_operand.vmem [shape: f32[2,16,64], index: 0, kind: input, shape index: {}]   ;;  %s3862_s1 = inlined_call_operand.vmem [shape: f32[40,16], index: 1, kind: input, shape index: {}]   ;;  %s3863_s2 = inlined_call_operand.hbm [shape: f32[64,144], index: 2, kind: input, shape index: {}]   ;;  %s3864_s3 = inlined_call_operand.hbm [shape: f32[3,144,272], index: 3, kind: input, shape index: {}]   ;;  %s3865_s4 = inlined_call_operand.vmem [shape: f32[1,272], index: 4, kind: input, shape index: {}]   ;;  %s3866_s5 = inlined_call_operand.hbm [shape: f32[3,272,256], index: 5, kind: input, shape index: {}]   ;;  %s3867_s6 = inlined_call_operand.vmem [shape: f32[1,256], index: 6, kind: input, shape index: {}]   ;;  %s3868_s7 = inlined_call_operand.hbm [shape: f32[2,8,32,32], index: 7, kind: output, shape index: {}]  }
   0x1   :  { %13 = vsyncpa [#allocation6], 0 }
   0x2   :  { %14 = vsyncpa [#allocation4], 0 }
   0x3   :  { %16 = vsyncpa [#allocation4 + $0x1], 0  ;;  %s3107_s24 = smov 0   ;;  %s3109_s25 = smov 0  }
   0x4   :  { %s3111_s26 = smov 0   ;;  %s3113_s27 = smov 0  }
   0x5   :  { %s3115_s28 = smov 0   ;;  %s3117_s29 = smov 0  }
   0x6 LB: > { %s2661_s30 = sadd.s32 4294967295, %s3050_s29   ;;  %s2662_s8 = sadd.s32 4294967294, %s3050_s29   ;;  %s3050_s29 = sphi %s3117_s29, %s22_s29   ;;  %s3046_s28 = sphi %s3115_s28, %s3879_s28   ;;  %s3042_s27 = sphi %s3113_s27, %s3878_s27   ;;  %s3038_s26 = sphi %s3111_s26, %s3877_s26   ;;  %s3034_s25 = sphi %s3109_s25, %s3876_s25   ;;  %s3030_s24 = sphi %s3107_s24, %s3875_s24  }
   0x7   : > { %s34_s9 = sadd.s32 1, %s3046_s28  ;;  %s200_s10 = sadd.s32 1, %s3038_s26 }
   0x8   : > { %p36_p0 = scmp.ge.s32.totalorder %s34_s9, 2  ;;  %p210_p1 = scmp.ne.s32.totalorder %s3038_s26, %s3034_s25 }
   0x9   : > { %p211_p2 = scmp.eq.s32.totalorder %s2661_s30, 1  ;;  %p216_p3 = scmp.ne.s32.totalorder %s3034_s25, %s3030_s24 }
   0xa   : > { %s3881_s9 = smov (%p36_p0, %s34_s9), 0  ;;  %p217_p5 = scmp.eq.s32.totalorder %s2662_s8, 1 }
   0xb   : > { %p3147_p4 = por %p211_p2, %p210_p1  ;;  %s195_s12 = ssub.s32 %s3046_s28, %s3881_s9 }
   0xc   : > { %p2663_p6 = scmp.ge.s32.totalorder %s3050_s29, 1  ;;  %p198_p7 = scmp.eq.s32.totalorder %s195_s12, 0 }
   0xd   : > { %p3154_p8 = por %p217_p5, %p216_p3  ;;  %p224_p9 = scmp.lt.s32.totalorder %s3050_s29, 3 }
   0xe   : > { %s3160_s14 = scalar_select %p198_p7, %s3038_s26, %s200_s10  }
   0xf   : > { %s3870_s13 = scalar_select %p3154_p8, 1, 0 }
  0x10   : > { %p3162_p10 = pnand %p2663_p6, %p224_p9  ;;  %p3166_p11 = scmp.eq.s32.totalorder %s2661_s30, 0 }
  0x11   : > { %s3052_s17 = smov [#allocation5]   ;;  %s3053_s20 = smov [#allocation2]  }
  0x12   : > { %p2805_p12 = pneg %p3162_p10  ;;  %s258_s18 = sshll.u32 %s3052_s17, 4  ;;  %s259_s18 = int_to_ptr.vmem [resolvable:$true] %s258_s18 }
  0x13   : > { %s245_s21 = sshll.u32 %s3053_s20, 4  ;;  %s2899_s22 = scalar_lea.vmem %s259_s18, 20736  ;;  %s246_s21 = int_to_ptr.vmem [resolvable:$true] %s245_s21 }
  0x14   : > { %p3174_p13 = pnand %p3166_p11, %p2805_p12  ;;  %p2900_p1 = scmp.ne.s32.totalorder %s259_s18, %s2899_s22 }
  0x15   : > { %p2907_p5 = scmp.lt.s32.totalorder %s259_s18, %s259_s18  ;;  %p2908_p6 = scmp.lt.s32.totalorder %s2899_s22, %s2899_s22 }
  0x16   : > { %p2890_p0 = pneg %p3174_p13 }
  0x17   : > { %p2909_p7 = por %p2908_p6, %p2907_p5 }
  0x18   : > { %p2902_p2 = pnand %p2900_p1, %p2890_p0 }
  0x1a   : > { %p2903_p3 = pneg %p2902_p2 }
  0x1c   : > { %p2910_p9 = pnand %p2909_p7, %p2903_p3 }
  0x1e   : > { %2913 = shalt.err (!%p2910_p9)
}
  0x1f   : > { %s3054_s23 = smov 384   ;;  %s3055_s30 = smov 24  }
  0x20   : > { %2811 = dma.hbm_to_vmem [thread:$0]  (!%p3174_p13), %s3864_s3, 20736, %s259_s18, [#allocation6], %s3054_s23, %s3054_s23, %s3055_s30  }
  0x21   : > { %s2925_s12 = scalar_lea.vmem %s246_s21, 2048  ;;  %p2933_p8 = scmp.lt.s32.totalorder %s246_s21, %s246_s21 }
  0x22   : > { %p2926_p12 = scmp.ne.s32.totalorder %s246_s21, %s2925_s12  ;;  %p2934_p5 = scmp.lt.s32.totalorder %s2925_s12, %s2925_s12 }
  0x24   : > { %p2928_p1 = pnand %p2926_p12, %p2890_p0  ;;  %p2935_p3 = por %p2934_p5, %p2933_p8 }
  0x26   : > { %p2929_p2 = pneg %p2928_p1 }
  0x28   : > { %p2936_p6 = pnand %p2935_p3, %p2929_p2 }
  0x2a   : > { %2939 = shalt.err (!%p2936_p6)
}
  0x2b   : > { %s3056_s17 = smov 256   ;;  %s3057_s20 = smov 16  }
  0x2c   : > { %2808 = dma.hbm_to_vmem [thread:$0]  (!%p3174_p13), %s3863_s2, 2048, %s246_s21, [#allocation3], %s3056_s17, %s3056_s17, %s3057_s20  }
  0x2d   : > { %s3058_s18 = smov [#allocation7]  }
  0x2e   : > { %s274_s23 = sshll.u32 %s3058_s18, 4  ;;  %s275_s23 = int_to_ptr.vmem [resolvable:$true] %s274_s23 }
  0x2f   : > { %s2951_s30 = scalar_lea.vmem %s275_s23, 26112  ;;  %p2959_p12 = scmp.lt.s32.totalorder %s275_s23, %s275_s23 }
  0x30   : > { %p2952_p7 = scmp.ne.s32.totalorder %s275_s23, %s2951_s30  ;;  %p2960_p1 = scmp.lt.s32.totalorder %s2951_s30, %s2951_s30 }
  0x32   : > { %p2954_p9 = pnand %p2952_p7, %p2890_p0  ;;  %p2961_p2 = por %p2960_p1, %p2959_p12 }
  0x34   : > { %p2955_p8 = pneg %p2954_p9 }
  0x36   : > { %p2962_p5 = pnand %p2961_p2, %p2955_p8 }
  0x38   : > { %2965 = shalt.err (!%p2962_p5)
}
  0x39   : > { %2814 = dma.hbm_to_vmem [thread:$0]  (!%p3174_p13), %s3866_s5, 26112, %s275_s23, [#allocation6], %s3056_s17, %s3056_s17, %s3057_s20  }
  0x3a   : > { %301 = sbr.rel (%p3162_p10) target bundleno = 1252 (0x4e4), region = 48 }
  0x3f   : > { %3017 = dma.done.wait (%p3166_p11), [#allocation3], 2048  }
  0x40   : > { %3019 = vsyncadd (%p3166_p11), [#allocation3], 4294965248 }
  0x41   : > { %3021 = dma.done.wait (%p3166_p11), [#allocation6], 46848  }
  0x42   : > { %3023 = vsyncadd (%p3166_p11), [#allocation6], 4294920448  ;;  %p346_p0 = scmp.lt.s32.totalorder %s3042_s27, 1  ;;  %v3059_v0 = vmov 0.0   ;;  %vm3060_vm0 = vmmov 0   ;;  %v358_v3 = vld [vmem:[%s3862_s1] sm:$0xff] }
  0x43   : > { %2772 = vmatprep.subr.mxu0 %v3059_v0  ;;  %2776 = vmatprep.mubr.msk.f32.mxu0 %vm3060_vm0, %v3059_v0  ;;  %vm365_vm1 = vcmask 130048   ;;  %v486_v4 = vld [vmem:[#allocation2 + $0x78] sm:$0xff]  ;;  %v485_v5 = vld [vmem:[#allocation2 + $0x70] sm:$0xff]  ;;  %v484_v6 = vld [vmem:[#allocation2 + $0x68] sm:$0xff]  ;;  %vm487_vm2 = vcmask 523264   ;;  %vm1186_vm3 = vcmask 1045504  }
  0x44   : > { %s347_s15 = scalar_select %p346_p0, %s3042_s27, 1  ;;  %567 = vmatprep.mubr.f32.mxu1 %v3059_v0  ;;  %519 = vmatprep.subr.mxu1 %v486_v4  ;;  %v483_v7 = vld [vmem:[#allocation2 + $0x60] sm:$0xff]  ;;  %v482_v8 = vld [vmem:[#allocation2 + $0x58] sm:$0xff]  ;;  %v359_v9 = vld [vmem:[%s3862_s1 + $0x8] sm:$0xff]  ;;  %vm717_vm4 = vcmask 1046528   ;;  %vm2406_vm7 = vcmask 261120  }
  0x45   : > { %520 = vmatpush1.msra.mxu1 %v485_v5  ;;  %v481_v10 = vld [vmem:[#allocation2 + $0x50] sm:$0xff]  ;;  %v480_v11 = vld [vmem:[#allocation2 + $0x48] sm:$0xff]  ;;  %v479_v12 = vld [vmem:[#allocation2 + $0x40] sm:$0xff]  ;;  %s343_s22 = sand.u32 1, %s3034_s25   ;;  %s3061_s23 = smov 96  }
  0x46   : > { %s2763_s19 = sshll.u32 %s347_s15, 4  ;;  %521 = vmatprep.subr.mxu1 %v484_v6  ;;  %v478_v13 = vld [vmem:[#allocation2 + $0x38] sm:$0xff]  ;;  %v360_v14 = vld [vmem:[%s3862_s1 + $0x10] sm:$0xff]  ;;  %v476_v16 = vld [vmem:[#allocation2 + $0x28] sm:$0xff]  ;;  %s2673_s8 = sshll.u32 %s343_s22, 8 }
  0x47   : > { %s350_s20 = scalar_lea.vmem %s3861_s0, %s2763_s19  ;;  %522 = vmatpush1.msra.mxu1 %v483_v7  ;;  %v477_v15 = vld [vmem:[#allocation2 + $0x30] sm:$0xff]  ;;  %v475_v17 = vld [vmem:[#allocation2 + $0x20] sm:$0xff]  ;;  %v474_v18 = vld [vmem:[#allocation2 + $0x18] sm:$0xff]  ;;  %s3712_s18 = scalar_lea.vmem [#allocation8], %s2673_s8 }
  0x48   : > { %v364_v1 = vld [vmem:[%s350_s20 + $0x8] sm:$0xff]  ;;  %v363_v2 = vld [vmem:[%s350_s20] sm:$0xff]  ;;  %523 = vmatprep.subr.mxu1 %v482_v8  ;;  %v361_v19 = vld [vmem:[%s3862_s1 + $0x18] sm:$0xff]  ;;  %s3062_s30 = smov 64   ;;  %s3063_s10 = smov 32  }
  0x49   : > { %2773 = vmatpush3.msra.mxu0 %v364_v1  ;;  %524 = vmatpush1.msra.mxu1 %v481_v10  ;;  %v473_v20 = vld [vmem:[#allocation2 + $0x10] sm:$0xff]  ;;  %v472_v21 = vld [vmem:[#allocation2 + $0x8] sm:$0xff]  ;;  %v362_v22 = vld [vmem:[%s3862_s1 + $0x20] sm:$0xff]  ;;  %s2764_s12 = sshll.u32 %s3042_s27, 12  ;;  %s2542_s15 = sshll.u32 %s3712_s18, 4  ;;  %s3810_s15 = int_to_ptr.vmem [resolvable:$true] %s2542_s15 }
  0x4a   : > { %2774 = vmatprep.subr.mxu0 %v3059_v0  ;;  %525 = vmatprep.subr.mxu1 %v480_v11  ;;  %v471_v23 = vld [vmem:[#allocation2] sm:$0xff]  ;;  %v698_v25 = vld [vmem:[#allocation5 + $0x318] sm:$0xff]  ;;  %v696_v26 = vld [vmem:[#allocation5 + $0x308] sm:$0xff]  ;;  %s3808_s17 = scalar_lea.hbm %s3868_s7, %s2764_s12  ;;  %s3816_s27 = scalar_lea.sflag [#allocation4], %s343_s22 }
  0x4b   : > { %2775 = vmatpush3.msra.mxu0 %v363_v2  ;;  %526 = vmatpush1.msra.mxu1 %v479_v12  ;;  %v699_v24 = vld [vmem:[#allocation5 + $0x320] sm:$0xff]  ;;  %v693_v28 = vld [vmem:[#allocation5 + $0x2f0] sm:$0xff]  ;;  %v692_v29 = vld [vmem:[#allocation5 + $0x2e8] sm:$0xff]  ;;  %s2966_s20 = scalar_lea.vmem %s3810_s15, 4096  ;;  %s3064_s16 = smov [#allocation8]  }
  0x4c   : > { %2777 = vmatmul.mubr.msk.f32.vlgmr.msra.gmra.mxu0 %vm365_vm1, %v358_v3  ;;  %527 = vmatprep.subr.mxu1 %v478_v13  ;;  %v695_v27 = vld [vmem:[#allocation5 + $0x300] sm:$0xff]  ;;  %v690_v30 = vld [vmem:[#allocation5 + $0x2d8] sm:$0xff]  ;;  %v689_v31 = vld [vmem:[#allocation5 + $0x2d0] sm:$0xff]  ;;  %p2967_p10 = scmp.ne.s32.totalorder %s3810_s15, %s2966_s20  ;;  %s2970_s8 = sshll.u32 %s3064_s16, 4  ;;  %s2971_s8 = int_to_ptr.vmem [resolvable:$false] %s2970_s8 }
  0x4d   : > { %2779 = vmatprep.mubr.msk.f32.mxu0 %vm3060_vm0, %v3059_v0  ;;  %528 = vmatpush1.msra.mxu1 %v477_v15  ;;  %v687_v32 = vld [vmem:[#allocation5 + $0x2c0] sm:$0xff]  ;;  %v686_v33 = vld [vmem:[#allocation5 + $0x2b8] sm:$0xff]  ;;  %v684_v34 = vld [vmem:[#allocation5 + $0x2a8] sm:$0xff]  ;;  %p2973_p3 = scmp.lt.s32.totalorder %s3810_s15, %s2971_s8 }
  0x4e   : > { %529 = vmatprep.subr.mxu1 %v476_v16  ;;  %751 = vmatprep.subr.mxu0 %v699_v24  ;;  %v683_v35 = vld [vmem:[#allocation5 + $0x2a0] sm:$0xff]  ;;  %v681_v36 = vld [vmem:[#allocation5 + $0x290] sm:$0xff]  ;;  %v680_v37 = vld [vmem:[#allocation5 + $0x288] sm:$0xff]  ;;  %p2968_p11 = pnand %p2967_p10, %p3147_p4 }
  0x4f   : > { %530 = vmatpush1.msra.mxu1 %v475_v17  ;;  %752 = vmatpush1.msra.mxu0 %v698_v25  ;;  %v678_v38 = vld [vmem:[#allocation5 + $0x278] sm:$0xff]  ;;  %v677_v39 = vld [vmem:[#allocation5 + $0x270] sm:$0xff]  ;;  %v675_v40 = vld [vmem:[#allocation5 + $0x260] sm:$0xff] }
  0x50   : > { %2780 = vmatmul.mubr.msk.f32.gmra.mxu0 %vm365_vm1, %v359_v9  ;;  %531 = vmatprep.subr.mxu1 %v474_v18  ;;  %v674_v41 = vld [vmem:[#allocation5 + $0x258] sm:$0xff]  ;;  %v672_v42 = vld [vmem:[#allocation5 + $0x248] sm:$0xff]  ;;  %v671_v43 = vld [vmem:[#allocation5 + $0x240] sm:$0xff]  ;;  %p2969_p13 = pneg %p2968_p11 }
  0x51   : > { %2782 = vmatprep.mubr.msk.f32.mxu0 %vm3060_vm0, %v3059_v0  ;;  %532 = vmatpush1.msra.mxu1 %v473_v20  ;;  %v669_v44 = vld [vmem:[#allocation5 + $0x230] sm:$0xff]  ;;  %v668_v45 = vld [vmem:[#allocation5 + $0x228] sm:$0xff]  ;;  %v666_v46 = vld [vmem:[#allocation5 + $0x218] sm:$0xff] }
  0x52   : > { %533 = vmatprep.subr.mxu1 %v472_v21  ;;  %753 = vmatprep.subr.mxu0 %v696_v26  ;;  %v665_v47 = vld [vmem:[#allocation5 + $0x210] sm:$0xff]  ;;  %v663_v48 = vld [vmem:[#allocation5 + $0x200] sm:$0xff]  ;;  %v662_v49 = vld [vmem:[#allocation5 + $0x1f8] sm:$0xff] }
  0x53   : > { %534 = vmatpush1.msra.mxu1 %v471_v23  ;;  %754 = vmatpush1.msra.mxu0 %v695_v27  ;;  %v700_v50 = vld [vmem:[#allocation5 + $0x328] sm:$0xff]  ;;  %v697_v52 = vld [vmem:[#allocation5 + $0x310] sm:$0xff]  ;;  %v694_v54 = vld [vmem:[#allocation5 + $0x2f8] sm:$0xff] }
  0x54   : > { %2783 = vmatmul.mubr.msk.f32.gmra.mxu0 %vm365_vm1, %v360_v14  ;;  %846 = vmatprep.subr.mxu1 %v3059_v0  ;;  %v691_v56 = vld [vmem:[#allocation5 + $0x2e0] sm:$0xff]  ;;  %v688_v58 = vld [vmem:[#allocation5 + $0x2c8] sm:$0xff]  ;;  %v685_v60 = vld [vmem:[#allocation5 + $0x2b0] sm:$0xff] }
  0x55   : > { %2785 = vmatprep.mubr.msk.f32.mxu0 %vm3060_vm0, %v3059_v0  ;;  %755 = vmatprep.subr.mxu0 %v693_v28  ;;  %v682_v62 = vld [vmem:[#allocation5 + $0x298] sm:$0xff]  ;;  %v679_v1 = vld [vmem:[#allocation5 + $0x280] sm:$0xff]  ;;  %v676_v3 = vld [vmem:[#allocation5 + $0x268] sm:$0xff] }
  0x56   : > { %756 = vmatpush1.msra.mxu0 %v692_v29  ;;  %v673_v5 = vld [vmem:[#allocation5 + $0x250] sm:$0xff]  ;;  %v670_v7 = vld [vmem:[#allocation5 + $0x238] sm:$0xff]  ;;  %v667_v8 = vld [vmem:[#allocation5 + $0x220] sm:$0xff] }
  0x57   : > { %757 = vmatprep.subr.mxu0 %v690_v30  ;;  %v664_v9 = vld [vmem:[#allocation5 + $0x208] sm:$0xff]  ;;  %v659_v11 = vld [vmem:[#allocation5 + $0x1e0] sm:$0xff]  ;;  %v661_v12 = vld [vmem:[#allocation5 + $0x1f0] sm:$0xff] }
  0x58   : > { %2786 = vmatmul.mubr.msk.f32.gmra.mxu0 %vm365_vm1, %v361_v19  ;;  %v660_v10 = vld [vmem:[#allocation5 + $0x1e8] sm:$0xff]  ;;  %v657_v13 = vld [vmem:[#allocation5 + $0x1d0] sm:$0xff]  ;;  %v658_v15 = vld [vmem:[#allocation5 + $0x1d8] sm:$0xff] }
  0x59   : > { %2788 = vmatprep.mubr.msk.f32.mxu0 %vm3060_vm0, %v3059_v0  ;;  %758 = vmatpush1.msra.mxu0 %v689_v31  ;;  %v656_v14 = vld [vmem:[#allocation5 + $0x1c8] sm:$0xff]  ;;  %v654_v16 = vld [vmem:[#allocation5 + $0x1b8] sm:$0xff]  ;;  %v653_v17 = vld [vmem:[#allocation5 + $0x1b0] sm:$0xff] }
  0x5a   : > { %759 = vmatprep.subr.mxu0 %v687_v32  ;;  %v655_v18 = vld [vmem:[#allocation5 + $0x1c0] sm:$0xff]  ;;  %v705_v19 = vld [vmem:[#allocation5 + $0x350] sm:$0xff]  ;;  %v704_v20 = vld [vmem:[#allocation5 + $0x348] sm:$0xff] }
  0x5b   : > { %760 = vmatpush1.msra.mxu0 %v686_v33  ;;  %v706_v21 = vld [vmem:[#allocation5 + $0x358] sm:$0xff]  ;;  %v701_v23 = vld [vmem:[#allocation5 + $0x330] sm:$0xff]  ;;  %v703_v24 = vld [vmem:[#allocation5 + $0x340] sm:$0xff] }
  0x5c   : > { %2789 = vmatmul.mubr.msk.f32.gmra.mxu0 %vm365_vm1, %v362_v22  ;;  %761 = vmatprep.subr.mxu0 %v684_v34  ;;  %v702_v22 = vld [vmem:[#allocation5 + $0x338] sm:$0xff]  ;;  %v644_v25 = vld [vmem:[#allocation5 + $0x170] sm:$0xff] }
  0x5d   : > { %762 = vmatpush1.msra.mxu0 %v683_v35 }
  0x5e   : > { %763 = vmatprep.subr.mxu0 %v681_v36 }
  0x5f   : > { %764 = vmatpush1.msra.mxu0 %v680_v37 }
  0x60   : > { %765 = vmatprep.subr.mxu0 %v678_v38 }
  0x61   : > { %766 = vmatpush1.msra.mxu0 %v677_v39 }
  0x62   : > { %767 = vmatprep.subr.mxu0 %v675_v40 }
  0x63   : > { %768 = vmatpush1.msra.mxu0 %v674_v41 }
  0x64   : > { %769 = vmatprep.subr.mxu0 %v672_v42  ;;  %v643_v42 = vld [vmem:[#allocation5 + $0x168] sm:$0xff] }
  0x65   : > { %770 = vmatpush1.msra.mxu0 %v671_v43  ;;  %v645_v43 = vld [vmem:[#allocation5 + $0x178] sm:$0xff] }
  0x66   : > { %771 = vmatprep.subr.mxu0 %v669_v44 }
  0x67   : > { %772 = vmatpush1.msra.mxu0 %v668_v45 }
  0x68   : > { %773 = vmatprep.subr.mxu0 %v666_v46 }
  0x69   : > { %774 = vmatpush1.msra.mxu0 %v665_v47  ;;  %v641_v47 = vld [vmem:[#allocation5 + $0x158] sm:$0xff] }
  0x6a   : > { %775 = vmatprep.subr.mxu0 %v663_v48 }
  0x6b   : > { %776 = vmatpush1.msra.mxu0 %v662_v49 }
  0x6c   : > { %777 = vmatprep.subr.mxu0 %v660_v10 }
  0x6d   : > { %778 = vmatpush1.msra.mxu0 %v659_v11 }
  0x6e   : > { %779 = vmatprep.subr.mxu0 %v657_v13 }
  0x6f   : > { %780 = vmatpush1.msra.mxu0 %v656_v14 }
  0x70   : > { %781 = vmatprep.subr.mxu0 %v654_v16  ;;  %v631_v16 = vld [vmem:[#allocation5 + $0x108] sm:$0xff] }
  0x71   : > { %782 = vmatpush1.msra.mxu0 %v653_v17  ;;  %v633_v17 = vld [vmem:[#allocation5 + $0x118] sm:$0xff] }
  0x72   : > { %811 = vmatprep.subr.mxu0 %v705_v19  ;;  %v629_v19 = vld [vmem:[#allocation5 + $0xf8] sm:$0xff] }
  0x73   : > { %812 = vmatpush2.msra.mxu0 %v704_v20  ;;  %v628_v20 = vld [vmem:[#allocation5 + $0xf0] sm:$0xff] }
  0x74   : > { %813 = vmatprep.subr.mxu0 %v702_v22 }
  0x75   : > { %814 = vmatpush2.msra.mxu0 %v701_v23  ;;  %v626_v23 = vld [vmem:[#allocation5 + $0xe0] sm:$0xff] }
  0x76   : > { %946 = vmatprep.subr.mxu0 %v644_v25  ;;  %v625_v25 = vld [vmem:[#allocation5 + $0xd8] sm:$0xff] }
 0x10c   : > { %v447_v51 = vpop.f32.mrf.mxu0 }
 0x10d   : > { %2681 = vmatmul.mubr.msk.f32.vlgmr.msra.gmra.mxu1 %vm487_vm2, %v447_v51  ;;  %v642_v51 = vld [vmem:[#allocation5 + $0x160] sm:$0xff] }
 0x10e   : > { %v2778_v53 = vpop.f32.mrf.mxu0  ;;  %573 = vmatprep.mubr.f32.mxu1 %v3059_v0  ;;  %847 = vmatpush1.msra.mxu1 %v700_v50  ;;  %v640_v50 = vld [vmem:[#allocation5 + $0x150] sm:$0xff] }
 0x10f   : > { %848 = vmatprep.subr.mxu1 %v3059_v0 }
 0x110   : > { %v452_v55 = vpop.f32.mrf.mxu0  ;;  %849 = vmatpush1.msra.mxu1 %v697_v52 }
 0x111   : > { %2682 = vmatmul.mubr.msk.f32.gmra.mxu1 %vm487_vm2, %v452_v55  ;;  %850 = vmatprep.subr.mxu1 %v3059_v0 }
 0x112   : > { %v2781_v57 = vpop.f32.mrf.mxu0  ;;  %579 = vmatprep.mubr.f32.mxu1 %v3059_v0  ;;  %851 = vmatpush1.msra.mxu1 %v694_v54 }
 0x113   : > { %852 = vmatprep.subr.mxu1 %v3059_v0  ;;  %v638_v57 = vld [vmem:[#allocation5 + $0x140] sm:$0xff] }
 0x114   : > { %v457_v59 = vpop.f32.mrf.mxu0  ;;  %853 = vmatpush1.msra.mxu1 %v691_v56 }
 0x115   : > { %2683 = vmatmul.mubr.msk.f32.gmra.mxu1 %vm487_vm2, %v457_v59  ;;  %854 = vmatprep.subr.mxu1 %v3059_v0 }
 0x116   : > { %v2784_v61 = vpop.f32.mrf.mxu0  ;;  %585 = vmatprep.mubr.f32.mxu1 %v3059_v0  ;;  %855 = vmatpush1.msra.mxu1 %v688_v58 }
 0x117   : > { %856 = vmatprep.subr.mxu1 %v3059_v0 }
 0x118   : > { %v462_v63 = vpop.f32.mrf.mxu0  ;;  %857 = vmatpush1.msra.mxu1 %v685_v60 }
 0x119   : > { %2684 = vmatmul.mubr.msk.f32.gmra.mxu1 %vm487_vm2, %v462_v63  ;;  %858 = vmatprep.subr.mxu1 %v3059_v0  ;;  %v639_v63 = vld [vmem:[#allocation5 + $0x148] sm:$0xff] }
 0x11a   : > { %v2787_v2 = vpop.f32.mrf.mxu0  ;;  %591 = vmatprep.mubr.f32.mxu1 %v3059_v0  ;;  %859 = vmatpush1.msra.mxu1 %v682_v62  ;;  %v637_v62 = vld [vmem:[#allocation5 + $0x138] sm:$0xff] }
 0x11b   : > { %860 = vmatprep.subr.mxu1 %v3059_v0 }
 0x11c   : > { %v467_v4 = vpop.f32.mrf.mxu0  ;;  %861 = vmatpush1.msra.mxu1 %v679_v1 }
 0x11d   : > { %2685 = vmatmul.mubr.msk.f32.gmra.mxu1 %vm487_vm2, %v467_v4  ;;  %862 = vmatprep.subr.mxu1 %v3059_v0 }
 0x11e   : > { %v2790_v6 = vpop.f32.mrf.mxu0  ;;  %863 = vmatpush1.msra.mxu1 %v676_v3 }
 0x11f   : > { %864 = vmatprep.subr.mxu1 %v3059_v0 }
 0x120   : > { %865 = vmatpush1.msra.mxu1 %v673_v5  ;;  %v635_v5 = vld [vmem:[#allocation5 + $0x128] sm:$0xff] }
 0x121   : > { %866 = vmatprep.subr.mxu1 %v3059_v0 }
 0x122   : > { %867 = vmatpush1.msra.mxu1 %v670_v7  ;;  %v634_v7 = vld [vmem:[#allocation5 + $0x120] sm:$0xff] }
 0x123   : > { %868 = vmatprep.subr.mxu1 %v3059_v0 }
 0x124   : > { %869 = vmatpush1.msra.mxu1 %v667_v8  ;;  %v636_v8 = vld [vmem:[#allocation5 + $0x130] sm:$0xff] }
 0x125   : > { %870 = vmatprep.subr.mxu1 %v3059_v0 }
 0x126   : > { %871 = vmatpush1.msra.mxu1 %v664_v9 }
 0x127   : > { %872 = vmatprep.subr.mxu1 %v3059_v0 }
 0x128   : > { %873 = vmatpush1.msra.mxu1 %v661_v12  ;;  %v632_v12 = vld [vmem:[#allocation5 + $0x110] sm:$0xff] }
 0x129   : > { %874 = vmatprep.subr.mxu1 %v3059_v0 }
 0x12a   : > { %875 = vmatpush1.msra.mxu1 %v658_v15 }
 0x12b   : > { %876 = vmatprep.subr.mxu1 %v3059_v0 }
 0x12c   : > { %877 = vmatpush1.msra.mxu1 %v655_v18 }
 0x12d   : > { %906 = vmatprep.subr.mxu1 %v3059_v0 }
 0x12e   : > { %907 = vmatpush2.msra.mxu1 %v706_v21  ;;  %v630_v21 = vld [vmem:[#allocation5 + $0x100] sm:$0xff] }
 0x12f   : > { %908 = vmatprep.subr.mxu1 %v3059_v0 }
 0x130   : > { %909 = vmatpush2.msra.mxu1 %v703_v24 }
 0x131   : > { %1041 = vmatprep.subr.mxu1 %v3059_v0 }
 0x1cd   : > { %v3280_v26 = vpop.f32.mrf.mxu1 }
 0x1ce   : > { %v1187_v29 = vrot.slane %v3280_v26, 2  ;;  %v718_v38 = vrot.slane %v3280_v26, 1 }
 0x1cf   : > { %v3282_v27 = vpop.f32.mrf.mxu1 }
 0x1d0   : > { %v721_v31 = vrot.slane %v3282_v27, 1  ;;  %v1190_v34 = vrot.slane %v3282_v27, 2 }
 0x1d1   : > { %v3284_v28 = vpop.f32.mrf.mxu1 }
 0x1d2   : > { %v1188_v30 = vrot.slane %v3284_v28, 2  ;;  %v719_v32 = vrot.slane %v3284_v28, 1 }
 0x1d3   : > { %v3290_v33 = vpop.f32.mrf.mxu1 }
 0x1d4   : > { %v722_v35 = vrot.slane %v3290_v33, 1  ;;  %v1191_v36 = vrot.slane %v3290_v33, 2  ;;  %v3296_v37 = vsel %vm1186_vm3, %v1187_v29, %v1188_v30  ;;  %v720_v46 = vsel %vm717_vm4, %v718_v38, %v719_v32  ;;  %v627_v29 = vld [vmem:[#allocation5 + $0xe8] sm:$0xff]  ;;  %v617_v38 = vld [vmem:[#allocation5 + $0x98] sm:$0xff] }
 0x1d5   : > { %v3299_v39 = vpop.f32.mrf.mxu1 }
 0x1d6   : > { %v1193_v40 = vrot.slane %v3299_v39, 2  ;;  %v723_v41 = vsel %vm717_vm4, %v721_v31, %v722_v35  ;;  %v3304_v44 = vsel %vm1186_vm3, %v1190_v34, %v1191_v36  ;;  %v724_v53 = vrot.slane %v3299_v39, 1  ;;  %v622_v31 = vld [vmem:[#allocation5 + $0xc0] sm:$0xff]  ;;  %v620_v34 = vld [vmem:[#allocation5 + $0xb0] sm:$0xff] }
 0x1d7   : > { %v3306_v45 = vpop.f32.mrf.mxu1  ;;  %2686 = vmatprep.mubr.msk.f32.mxu0 %vm365_vm1, %v723_v41  ;;  %2691 = vmatprep.mubr.msk.f32.mxu1 %vm365_vm1, %v723_v41  ;;  %v618_v41 = vld [vmem:[#allocation5 + $0xa0] sm:$0xff] }
 0x1d8   : > { %v726_v48 = vrot.slane %v3306_v45, 1  ;;  %v1195_v49 = vrot.slane %v3306_v45, 2  ;;  %816 = vmatmul.mubr.f32.vlgmr.msra.gmra.mxu0 %v720_v46  ;;  %911 = vmatmul.mubr.f32.vlgmr.msra.gmra.mxu1 %v720_v46  ;;  %v3314_v52 = vsel %vm1186_vm3, %v1188_v30, %v1193_v40  ;;  %v725_v3 = vsel %vm717_vm4, %v719_v32, %v724_v53  ;;  %v623_v30 = vld [vmem:[#allocation5 + $0xc8] sm:$0xff]  ;;  %v624_v32 = vld [vmem:[#allocation5 + $0xd0] sm:$0xff] }
 0x1d9   : > { %947 = vmatpush1.msra.mxu0 %v643_v42  ;;  %1042 = vmatpush1.msra.mxu1 %v645_v43  ;;  %v3317_v54 = vpop.f32.mrf.mxu1  ;;  %v614_v42 = vld [vmem:[#allocation5 + $0x80] sm:$0xff]  ;;  %v613_v43 = vld [vmem:[#allocation5 + $0x78] sm:$0xff]  ;;  %v615_v46 = vld [vmem:[#allocation5 + $0x88] sm:$0xff] }
 0x1da   : > { %v1197_v55 = vrot.slane %v3317_v54, 2  ;;  %948 = vmatprep.subr.mxu0 %v641_v47  ;;  %1043 = vmatprep.subr.mxu1 %v3059_v0  ;;  %v727_v56 = vsel %vm717_vm4, %v722_v35, %v726_v48  ;;  %v3323_v58 = vsel %vm1186_vm3, %v1191_v36, %v1195_v49  ;;  %v728_v2 = vrot.slane %v3317_v54, 1  ;;  %v619_v35 = vld [vmem:[#allocation5 + $0xa8] sm:$0xff]  ;;  %v621_v36 = vld [vmem:[#allocation5 + $0xb8] sm:$0xff] }
 0x1db   : > { %949 = vmatpush1.msra.mxu0 %v640_v50  ;;  %1044 = vmatpush1.msra.mxu1 %v642_v51  ;;  %v3325_v59 = vpop.f32.mrf.mxu1  ;;  %v611_v47 = vld [vmem:[#allocation5 + $0x68] sm:$0xff]  ;;  %v608_v50 = vld [vmem:[#allocation5 + $0x50] sm:$0xff] }
 0x1dc   : > { %v730_v60 = vrot.slane %v3325_v59, 1  ;;  %v1199_v61 = vrot.slane %v3325_v59, 2  ;;  %2687 = vmatprep.mubr.msk.f32.mxu0 %vm365_vm1, %v727_v56  ;;  %2692 = vmatprep.mubr.msk.f32.mxu1 %vm365_vm1, %v727_v56  ;;  %v3332_v1 = vsel %vm1186_vm3, %v1193_v40, %v1197_v55  ;;  %v729_v15 = vsel %vm717_vm4, %v724_v53, %v728_v2  ;;  %v616_v40 = vld [vmem:[#allocation5 + $0x90] sm:$0xff]  ;;  %v607_v51 = vld [vmem:[#allocation5 + $0x48] sm:$0xff]  ;;  %v609_v53 = vld [vmem:[#allocation5 + $0x58] sm:$0xff] }
 0x1dd   : > { %950 = vmatprep.subr.mxu0 %v638_v57  ;;  %1045 = vmatprep.subr.mxu1 %v3059_v0  ;;  %v3337_v4 = vpop.f32.mrf.mxu1  ;;  %v606_v56 = vld [vmem:[#allocation5 + $0x40] sm:$0xff] }
 0x1de   : > { %822 = vmatmul.mubr.f32.gmra.mxu0 %v725_v3  ;;  %916 = vmatmul.mubr.f32.gmra.mxu1 %v725_v3  ;;  %v3340_v6 = vrot.slane %v3337_v4, 2  ;;  %v3345_v9 = vsel %vm1186_vm3, %v1195_v49, %v1199_v61  ;;  %v731_v11 = vsel %vm717_vm4, %v726_v48, %v730_v60  ;;  %v732_v18 = vrot.slane %v3337_v4, 1  ;;  %v610_v48 = vld [vmem:[#allocation5 + $0x60] sm:$0xff]  ;;  %v612_v49 = vld [vmem:[#allocation5 + $0x70] sm:$0xff] }
 0x1df   : > { %951 = vmatpush1.msra.mxu0 %v637_v62  ;;  %1046 = vmatpush1.msra.mxu1 %v639_v63  ;;  %v3347_v10 = vpop.f32.mrf.mxu1  ;;  %v602_v57 = vld [vmem:[#allocation5 + $0x20] sm:$0xff]  ;;  %v603_v62 = vld [vmem:[#allocation5 + $0x28] sm:$0xff]  ;;  %v600_v3 = vld [vmem:[#allocation5 + $0x10] sm:$0xff] }
 0x1e0   : > { %952 = vmatprep.subr.mxu0 %v635_v5  ;;  %1047 = vmatprep.subr.mxu1 %v3059_v0  ;;  %v3353_v13 = vsel %vm1186_vm3, %v1197_v55, %v3340_v6  ;;  %v734_v14 = vrot.slane %v3347_v10, 1  ;;  %v733_v24 = vsel %vm717_vm4, %v728_v2, %v732_v18  ;;  %v604_v55 = vld [vmem:[#allocation5 + $0x30] sm:$0xff]  ;;  %v599_v63 = vld [vmem:[#allocation5 + $0x8] sm:$0xff]  ;;  %v598_v2 = vld [vmem:[#allocation5] sm:$0xff] }
 0x1e1   : > { %953 = vmatpush1.msra.mxu0 %v634_v7  ;;  %1048 = vmatpush1.msra.mxu1 %v636_v8  ;;  %v650_v5 = vld [vmem:[#allocation5 + $0x1a0] sm:$0xff]  ;;  %v649_v7 = vld [vmem:[#allocation5 + $0x198] sm:$0xff]  ;;  %v651_v8 = vld [vmem:[#allocation5 + $0x1a8] sm:$0xff] }
 0x1e2   : > { %2688 = vmatprep.mubr.msk.f32.mxu0 %vm365_vm1, %v731_v11  ;;  %2693 = vmatprep.mubr.msk.f32.mxu1 %vm365_vm1, %v731_v11  ;;  %v735_v22 = vsel %vm717_vm4, %v730_v60, %v734_v14  ;;  %v601_v60 = vld [vmem:[#allocation5 + $0x18] sm:$0xff]  ;;  %v647_v11 = vld [vmem:[#allocation5 + $0x188] sm:$0xff] }
 0x1e3   : > { %954 = vmatprep.subr.mxu0 %v632_v12  ;;  %1049 = vmatprep.subr.mxu1 %v3059_v0  ;;  %v646_v12 = vld [vmem:[#allocation5 + $0x180] sm:$0xff] }
 0x1e4   : > { %828 = vmatmul.mubr.f32.gmra.mxu0 %v729_v15  ;;  %921 = vmatmul.mubr.f32.gmra.mxu1 %v729_v15  ;;  %v1178_v15 = vld [vmem:[#allocation5 + $0x4d0] sm:$0xff] }
 0x1e5   : > { %955 = vmatpush1.msra.mxu0 %v631_v16  ;;  %1050 = vmatpush1.msra.mxu1 %v633_v17  ;;  %v1177_v16 = vld [vmem:[#allocation5 + $0x4c8] sm:$0xff]  ;;  %v1179_v17 = vld [vmem:[#allocation5 + $0x4d8] sm:$0xff] }
 0x1e6   : > { %956 = vmatprep.subr.mxu0 %v629_v19  ;;  %1051 = vmatprep.subr.mxu1 %v3059_v0  ;;  %v1174_v19 = vld [vmem:[#allocation5 + $0x4b0] sm:$0xff] }
 0x1e7   : > { %957 = vmatpush1.msra.mxu0 %v628_v20  ;;  %1052 = vmatpush1.msra.mxu1 %v630_v21  ;;  %v1176_v20 = vld [vmem:[#allocation5 + $0x4c0] sm:$0xff]  ;;  %v1171_v21 = vld [vmem:[#allocation5 + $0x498] sm:$0xff] }
 0x1e8   : > { %2689 = vmatprep.mubr.msk.f32.mxu0 %vm365_vm1, %v735_v22  ;;  %2694 = vmatprep.mubr.msk.f32.mxu1 %vm365_vm1, %v735_v22  ;;  %v1173_v22 = vld [vmem:[#allocation5 + $0x4a8] sm:$0xff] }
 0x1e9   : > { %958 = vmatprep.subr.mxu0 %v626_v23  ;;  %1053 = vmatprep.subr.mxu1 %v3059_v0  ;;  %v1168_v23 = vld [vmem:[#allocation5 + $0x480] sm:$0xff] }
 0x1ea   : > { %834 = vmatmul.mubr.f32.gmra.mxu0 %v733_v24  ;;  %926 = vmatmul.mubr.f32.gmra.mxu1 %v733_v24  ;;  %v1170_v24 = vld [vmem:[#allocation5 + $0x490] sm:$0xff] }
 0x1eb   : > { %959 = vmatpush1.msra.mxu0 %v625_v25  ;;  %1054 = vmatpush1.msra.mxu1 %v627_v29  ;;  %v1165_v25 = vld [vmem:[#allocation5 + $0x468] sm:$0xff]  ;;  %v1167_v29 = vld [vmem:[#allocation5 + $0x478] sm:$0xff] }
 0x1ec   : > { %960 = vmatprep.subr.mxu0 %v623_v30  ;;  %1055 = vmatprep.subr.mxu1 %v3059_v0  ;;  %v1162_v30 = vld [vmem:[#allocation5 + $0x450] sm:$0xff] }
 0x1ed   : > { %961 = vmatpush1.msra.mxu0 %v622_v31  ;;  %1056 = vmatpush1.msra.mxu1 %v624_v32  ;;  %v1164_v31 = vld [vmem:[#allocation5 + $0x460] sm:$0xff]  ;;  %v1159_v32 = vld [vmem:[#allocation5 + $0x438] sm:$0xff] }
 0x1ee   : > { %2690 = vmatprep.mubr.msk.f32.mxu0 %vm365_vm1, %v734_v14  ;;  %2695 = vmatprep.mubr.msk.f32.mxu1 %vm365_vm1, %v734_v14  ;;  %v648_v14 = vld [vmem:[#allocation5 + $0x190] sm:$0xff] }
 0x1ef   : > { %962 = vmatprep.subr.mxu0 %v620_v34  ;;  %1057 = vmatprep.subr.mxu1 %v3059_v0  ;;  %v1161_v34 = vld [vmem:[#allocation5 + $0x448] sm:$0xff] }
 0x1f0   : > { %840 = vmatmul.mubr.f32.gmra.mxu0 %v732_v18  ;;  %931 = vmatmul.mubr.f32.gmra.mxu1 %v732_v18  ;;  %v1175_v18 = vld [vmem:[#allocation5 + $0x4b8] sm:$0xff] }
 0x1f1   : > { %963 = vmatpush1.msra.mxu0 %v619_v35  ;;  %1058 = vmatpush1.msra.mxu1 %v621_v36  ;;  %v1157_v35 = vld [vmem:[#allocation5 + $0x428] sm:$0xff]  ;;  %v1156_v36 = vld [vmem:[#allocation5 + $0x420] sm:$0xff] }
 0x1f2   : > { %964 = vmatprep.subr.mxu0 %v617_v38  ;;  %2696 = vmatprep.mubr.msk.f32.mxu0 %vm365_vm1, %v3282_v27  ;;  %v1158_v38 = vld [vmem:[#allocation5 + $0x430] sm:$0xff] }
 0x1f3   : > { %1059 = vmatprep.subr.mxu1 %v3059_v0  ;;  %2701 = vmatprep.mubr.msk.f32.mxu1 %vm365_vm1, %v3282_v27  ;;  %v605_v27 = vld [vmem:[#allocation5 + $0x38] sm:$0xff] }
 0x1f4   : > { %965 = vmatpush1.msra.mxu0 %v616_v40  ;;  %1060 = vmatpush1.msra.mxu1 %v618_v41  ;;  %v1153_v40 = vld [vmem:[#allocation5 + $0x408] sm:$0xff]  ;;  %v1155_v41 = vld [vmem:[#allocation5 + $0x418] sm:$0xff] }
 0x1f5   : > { %966 = vmatprep.subr.mxu0 %v614_v42  ;;  %1061 = vmatprep.subr.mxu1 %v3059_v0  ;;  %v1151_v42 = vld [vmem:[#allocation5 + $0x3f8] sm:$0xff] }
 0x1f6   : > { %967 = vmatpush1.msra.mxu0 %v613_v43  ;;  %1062 = vmatpush1.msra.mxu1 %v615_v46  ;;  %v1150_v43 = vld [vmem:[#allocation5 + $0x3f0] sm:$0xff]  ;;  %v1152_v46 = vld [vmem:[#allocation5 + $0x400] sm:$0xff] }
 0x1f7   : > { %968 = vmatprep.subr.mxu0 %v611_v47  ;;  %1063 = vmatprep.subr.mxu1 %v3059_v0  ;;  %v1148_v47 = vld [vmem:[#allocation5 + $0x3e0] sm:$0xff] }
 0x1f8   : > { %969 = vmatpush1.msra.mxu0 %v610_v48  ;;  %1064 = vmatpush1.msra.mxu1 %v612_v49  ;;  %v1149_v48 = vld [vmem:[#allocation5 + $0x3e8] sm:$0xff] }
 0x1f9   : > { %970 = vmatprep.subr.mxu0 %v608_v50  ;;  %1065 = vmatprep.subr.mxu1 %v3059_v0  ;;  %v1145_v49 = vld [vmem:[#allocation5 + $0x3c8] sm:$0xff]  ;;  %v1144_v50 = vld [vmem:[#allocation5 + $0x3c0] sm:$0xff] }
 0x1fa   : > { %971 = vmatpush1.msra.mxu0 %v607_v51  ;;  %1066 = vmatpush1.msra.mxu1 %v609_v53  ;;  %v1146_v51 = vld [vmem:[#allocation5 + $0x3d0] sm:$0xff] }
 0x1fb   : > { %972 = vmatprep.subr.mxu0 %v605_v27  ;;  %1067 = vmatprep.subr.mxu1 %v3059_v0  ;;  %v1142_v53 = vld [vmem:[#allocation5 + $0x3b0] sm:$0xff]  ;;  %v1143_v27 = vld [vmem:[#allocation5 + $0x3b8] sm:$0xff] }
 0x1fc   : > { %973 = vmatpush1.msra.mxu0 %v604_v55  ;;  %1068 = vmatpush1.msra.mxu1 %v606_v56  ;;  %v1139_v55 = vld [vmem:[#allocation5 + $0x398] sm:$0xff]  ;;  %v1138_v56 = vld [vmem:[#allocation5 + $0x390] sm:$0xff] }
 0x1fd   : > { %974 = vmatprep.subr.mxu0 %v602_v57  ;;  %1069 = vmatprep.subr.mxu1 %v3059_v0  ;;  %v1140_v57 = vld [vmem:[#allocation5 + $0x3a0] sm:$0xff] }
 0x1fe   : > { %975 = vmatpush1.msra.mxu0 %v601_v60  ;;  %1070 = vmatpush1.msra.mxu1 %v603_v62  ;;  %v1136_v60 = vld [vmem:[#allocation5 + $0x380] sm:$0xff]  ;;  %v1135_v62 = vld [vmem:[#allocation5 + $0x378] sm:$0xff] }
 0x1ff   : > { %976 = vmatprep.subr.mxu0 %v599_v63  ;;  %1071 = vmatprep.subr.mxu1 %v3059_v0  ;;  %v1137_v63 = vld [vmem:[#allocation5 + $0x388] sm:$0xff] }
 0x200   : > { %977 = vmatpush1.msra.mxu0 %v598_v2  ;;  %1072 = vmatpush1.msra.mxu1 %v600_v3  ;;  %v1133_v2 = vld [vmem:[#allocation5 + $0x368] sm:$0xff]  ;;  %v1132_v3 = vld [vmem:[#allocation5 + $0x360] sm:$0xff] }
 0x201   : > { %1006 = vmatprep.subr.mxu0 %v650_v5  ;;  %1101 = vmatprep.subr.mxu1 %v3059_v0  ;;  %v1134_v5 = vld [vmem:[#allocation5 + $0x370] sm:$0xff] }
 0x202   : > { %1007 = vmatpush2.msra.mxu0 %v649_v7  ;;  %1102 = vmatpush2.msra.mxu1 %v651_v8  ;;  %v1184_v7 = vld [vmem:[#allocation5 + $0x500] sm:$0xff]  ;;  %v1183_v8 = vld [vmem:[#allocation5 + $0x4f8] sm:$0xff] }
 0x203   : > { %1008 = vmatprep.subr.mxu0 %v647_v11  ;;  %1103 = vmatprep.subr.mxu1 %v3059_v0  ;;  %v1185_v11 = vld [vmem:[#allocation5 + $0x508] sm:$0xff] }
 0x204   : > { %1009 = vmatpush2.msra.mxu0 %v646_v12  ;;  %1104 = vmatpush2.msra.mxu1 %v648_v14  ;;  %v1181_v12 = vld [vmem:[#allocation5 + $0x4e8] sm:$0xff]  ;;  %v1180_v14 = vld [vmem:[#allocation5 + $0x4e0] sm:$0xff] }
 0x205   : > { %1011 = vmatmul.mubr.f32.vlgmr.msra.gmra.mxu0 %v3280_v26  ;;  %1106 = vmatmul.mubr.f32.vlgmr.msra.gmra.mxu1 %v3280_v26  ;;  %v1172_v26 = vld [vmem:[#allocation5 + $0x4a0] sm:$0xff] }
 0x206   : > { %1220 = vmatprep.subr.mxu0 %v1178_v15  ;;  %1315 = vmatprep.subr.mxu1 %v3059_v0  ;;  %v1182_v15 = vld [vmem:[#allocation5 + $0x4f0] sm:$0xff] }
 0x207   : > { %2697 = vmatprep.mubr.msk.f32.mxu0 %vm365_vm1, %v3290_v33  ;;  %2702 = vmatprep.mubr.msk.f32.mxu1 %vm365_vm1, %v3290_v33  ;;  %v1169_v33 = vld [vmem:[#allocation5 + $0x488] sm:$0xff] }
 0x208   : > { %1221 = vmatpush1.msra.mxu0 %v1177_v16  ;;  %1316 = vmatpush1.msra.mxu1 %v1179_v17  ;;  %v1621_v16 = vld [vmem:[#allocation7 + $0x318] sm:$0xff]  ;;  %v1620_v17 = vld [vmem:[#allocation7 + $0x310] sm:$0xff] }
 0x209   : > { %1222 = vmatprep.subr.mxu0 %v1175_v18  ;;  %1317 = vmatprep.subr.mxu1 %v3059_v0  ;;  %v1619_v18 = vld [vmem:[#allocation7 + $0x308] sm:$0xff] }
 0x20a   : > { %1223 = vmatpush1.msra.mxu0 %v1174_v19  ;;  %1318 = vmatpush1.msra.mxu1 %v1176_v20  ;;  %v1203_v19 = vrot.slane %v3347_v10, 2  ;;  %v1618_v20 = vld [vmem:[#allocation7 + $0x300] sm:$0xff] }
 0x20b   : > { %1017 = vmatmul.mubr.f32.gmra.mxu0 %v3284_v28  ;;  %1111 = vmatmul.mubr.f32.gmra.mxu1 %v3284_v28  ;;  %v1166_v28 = vld [vmem:[#allocation5 + $0x470] sm:$0xff] }
 0x20c   : > { %1224 = vmatprep.subr.mxu0 %v1172_v26  ;;  %1319 = vmatprep.subr.mxu1 %v3059_v0  ;;  %v1610_v26 = vld [vmem:[#allocation7 + $0x2c0] sm:$0xff] }
 0x20d   : > { %2698 = vmatprep.mubr.msk.f32.mxu0 %vm365_vm1, %v3306_v45  ;;  %2703 = vmatprep.mubr.msk.f32.mxu1 %vm365_vm1, %v3306_v45  ;;  %v1163_v45 = vld [vmem:[#allocation5 + $0x458] sm:$0xff] }
 0x20e   : > { %1225 = vmatpush1.msra.mxu0 %v1171_v21  ;;  %1320 = vmatpush1.msra.mxu1 %v1173_v22  ;;  %v1608_v21 = vld [vmem:[#allocation7 + $0x2b0] sm:$0xff]  ;;  %v1607_v22 = vld [vmem:[#allocation7 + $0x2a8] sm:$0xff] }
 0x20f   : > { %1226 = vmatprep.subr.mxu0 %v1169_v33  ;;  %1321 = vmatprep.subr.mxu1 %v3059_v0  ;;  %v1606_v33 = vld [vmem:[#allocation7 + $0x2a0] sm:$0xff] }
 0x210   : > { %1227 = vmatpush1.msra.mxu0 %v1168_v23  ;;  %1322 = vmatpush1.msra.mxu1 %v1170_v24  ;;  %v1605_v23 = vld [vmem:[#allocation7 + $0x298] sm:$0xff]  ;;  %v1604_v24 = vld [vmem:[#allocation7 + $0x290] sm:$0xff] }
 0x211   : > { %1023 = vmatmul.mubr.f32.gmra.mxu0 %v3299_v39  ;;  %1116 = vmatmul.mubr.f32.gmra.mxu1 %v3299_v39  ;;  %v1160_v39 = vld [vmem:[#allocation5 + $0x440] sm:$0xff] }
 0x212   : > { %1228 = vmatprep.subr.mxu0 %v1166_v28  ;;  %1323 = vmatprep.subr.mxu1 %v3059_v0  ;;  %v1602_v28 = vld [vmem:[#allocation7 + $0x280] sm:$0xff] }
 0x213   : > { %2699 = vmatprep.mubr.msk.f32.mxu0 %vm365_vm1, %v3325_v59  ;;  %2704 = vmatprep.mubr.msk.f32.mxu1 %vm365_vm1, %v3325_v59  ;;  %v1613_v59 = vld [vmem:[#allocation7 + $0x2d8] sm:$0xff] }
 0x214   : > { %1229 = vmatpush1.msra.mxu0 %v1165_v25  ;;  %1324 = vmatpush1.msra.mxu1 %v1167_v29  ;;  %v1601_v25 = vld [vmem:[#allocation7 + $0x278] sm:$0xff]  ;;  %v1600_v29 = vld [vmem:[#allocation7 + $0x270] sm:$0xff] }
 0x215   : > { %1230 = vmatprep.subr.mxu0 %v1163_v45  ;;  %1325 = vmatprep.subr.mxu1 %v3059_v0  ;;  %v1599_v45 = vld [vmem:[#allocation7 + $0x268] sm:$0xff] }
 0x216   : > { %1231 = vmatpush1.msra.mxu0 %v1162_v30  ;;  %1326 = vmatpush1.msra.mxu1 %v1164_v31  ;;  %v1598_v30 = vld [vmem:[#allocation7 + $0x260] sm:$0xff]  ;;  %v1597_v31 = vld [vmem:[#allocation7 + $0x258] sm:$0xff] }
 0x217   : > { %1029 = vmatmul.mubr.f32.gmra.mxu0 %v3317_v54  ;;  %1121 = vmatmul.mubr.f32.gmra.mxu1 %v3317_v54  ;;  %v1154_v54 = vld [vmem:[#allocation5 + $0x410] sm:$0xff] }
 0x218   : > { %1232 = vmatprep.subr.mxu0 %v1160_v39  ;;  %1327 = vmatprep.subr.mxu1 %v3059_v0  ;;  %v1596_v39 = vld [vmem:[#allocation7 + $0x250] sm:$0xff] }
 0x219   : > { %2700 = vmatprep.mubr.msk.f32.mxu0 %vm365_vm1, %v3347_v10  ;;  %2705 = vmatprep.mubr.msk.f32.mxu1 %vm365_vm1, %v3347_v10  ;;  %v1616_v10 = vld [vmem:[#allocation7 + $0x2f0] sm:$0xff] }
 0x21a   : > { %1233 = vmatpush1.msra.mxu0 %v1159_v32  ;;  %1328 = vmatpush1.msra.mxu1 %v1161_v34  ;;  %v1595_v32 = vld [vmem:[#allocation7 + $0x248] sm:$0xff]  ;;  %v1594_v34 = vld [vmem:[#allocation7 + $0x240] sm:$0xff] }
 0x21b   : > { %1234 = vmatprep.subr.mxu0 %v1157_v35  ;;  %1329 = vmatprep.subr.mxu1 %v3059_v0  ;;  %v1593_v35 = vld [vmem:[#allocation7 + $0x238] sm:$0xff] }
 0x21c   : > { %1235 = vmatpush1.msra.mxu0 %v1156_v36  ;;  %1330 = vmatpush1.msra.mxu1 %v1158_v38  ;;  %v1592_v36 = vld [vmem:[#allocation7 + $0x230] sm:$0xff]  ;;  %v1591_v38 = vld [vmem:[#allocation7 + $0x228] sm:$0xff] }
 0x21d   : > { %1035 = vmatmul.mubr.f32.gmra.mxu0 %v3337_v4  ;;  %1126 = vmatmul.mubr.f32.gmra.mxu1 %v3337_v4  ;;  %v1147_v4 = vld [vmem:[#allocation5 + $0x3d8] sm:$0xff] }
 0x21e   : > { %1236 = vmatprep.subr.mxu0 %v1154_v54  ;;  %1331 = vmatprep.subr.mxu1 %v3059_v0  ;;  %v1590_v54 = vld [vmem:[#allocation7 + $0x220] sm:$0xff] }
 0x21f   : > { %1237 = vmatpush1.msra.mxu0 %v1153_v40  ;;  %2706 = vmatprep.mubr.msk.f32.mxu0 %vm365_vm1, %v3304_v44  ;;  %v1653_v40 = vld [vmem:[#allocation7 + $0x418] sm:$0xff] }
 0x220   : > { %1332 = vmatpush1.msra.mxu1 %v1155_v41  ;;  %2711 = vmatprep.mubr.msk.f32.mxu1 %vm365_vm1, %v3304_v44  ;;  %v1141_v44 = vld [vmem:[#allocation5 + $0x3a8] sm:$0xff]  ;;  %v1652_v41 = vld [vmem:[#allocation7 + $0x410] sm:$0xff] }
 0x221   : > { %1238 = vmatprep.subr.mxu0 %v1151_v42  ;;  %1333 = vmatprep.subr.mxu1 %v3059_v0  ;;  %v1651_v42 = vld [vmem:[#allocation7 + $0x408] sm:$0xff] }
 0x222   : > { %1239 = vmatpush1.msra.mxu0 %v1150_v43  ;;  %1334 = vmatpush1.msra.mxu1 %v1152_v46  ;;  %v1650_v43 = vld [vmem:[#allocation7 + $0x400] sm:$0xff]  ;;  %v1649_v46 = vld [vmem:[#allocation7 + $0x3f8] sm:$0xff] }
 0x223   : > { %1240 = vmatprep.subr.mxu0 %v1148_v47  ;;  %1335 = vmatprep.subr.mxu1 %v3059_v0  ;;  %v1657_v47 = vld [vmem:[#allocation7 + $0x438] sm:$0xff] }
 0x224   : > { %1241 = vmatpush1.msra.mxu0 %v1147_v4  ;;  %1336 = vmatpush1.msra.mxu1 %v1149_v48  ;;  %v1648_v4 = vld [vmem:[#allocation7 + $0x3f0] sm:$0xff] }
 0x225   : > { %1242 = vmatprep.subr.mxu0 %v1145_v49  ;;  %1337 = vmatprep.subr.mxu1 %v3059_v0  ;;  %v1656_v48 = vld [vmem:[#allocation7 + $0x430] sm:$0xff]  ;;  %v1647_v49 = vld [vmem:[#allocation7 + $0x3e8] sm:$0xff] }
 0x226   : > { %1243 = vmatpush1.msra.mxu0 %v1144_v50  ;;  %1338 = vmatpush1.msra.mxu1 %v1146_v51  ;;  %v1646_v50 = vld [vmem:[#allocation7 + $0x3e0] sm:$0xff]  ;;  %v1645_v51 = vld [vmem:[#allocation7 + $0x3d8] sm:$0xff] }
 0x227   : > { %1244 = vmatprep.subr.mxu0 %v1142_v53  ;;  %1339 = vmatprep.subr.mxu1 %v3059_v0  ;;  %v1644_v53 = vld [vmem:[#allocation7 + $0x3d0] sm:$0xff] }
 0x228   : > { %1245 = vmatpush1.msra.mxu0 %v1141_v44  ;;  %1340 = vmatpush1.msra.mxu1 %v1143_v27  ;;  %v1643_v44 = vld [vmem:[#allocation7 + $0x3c8] sm:$0xff]  ;;  %v1642_v27 = vld [vmem:[#allocation7 + $0x3c0] sm:$0xff] }
 0x229   : > { %1246 = vmatprep.subr.mxu0 %v1139_v55  ;;  %1341 = vmatprep.subr.mxu1 %v3059_v0  ;;  %v1641_v55 = vld [vmem:[#allocation7 + $0x3b8] sm:$0xff] }
 0x22a   : > { %1247 = vmatpush1.msra.mxu0 %v1138_v56  ;;  %1342 = vmatpush1.msra.mxu1 %v1140_v57  ;;  %v1640_v56 = vld [vmem:[#allocation7 + $0x3b0] sm:$0xff]  ;;  %v1639_v57 = vld [vmem:[#allocation7 + $0x3a8] sm:$0xff] }
 0x22b   : > { %1248 = vmatprep.subr.mxu0 %v1136_v60  ;;  %1343 = vmatprep.subr.mxu1 %v3059_v0  ;;  %v1638_v60 = vld [vmem:[#allocation7 + $0x3a0] sm:$0xff] }
 0x22c   : > { %1249 = vmatpush1.msra.mxu0 %v1135_v62  ;;  %1344 = vmatpush1.msra.mxu1 %v1137_v63  ;;  %v1637_v62 = vld [vmem:[#allocation7 + $0x398] sm:$0xff]  ;;  %v1636_v63 = vld [vmem:[#allocation7 + $0x390] sm:$0xff] }
 0x22d   : > { %1250 = vmatprep.subr.mxu0 %v1133_v2  ;;  %1345 = vmatprep.subr.mxu1 %v3059_v0  ;;  %v1635_v2 = vld [vmem:[#allocation7 + $0x388] sm:$0xff] }
 0x22e   : > { %1251 = vmatpush1.msra.mxu0 %v1132_v3  ;;  %1346 = vmatpush1.msra.mxu1 %v1134_v5  ;;  %v1634_v3 = vld [vmem:[#allocation7 + $0x380] sm:$0xff]  ;;  %v1633_v5 = vld [vmem:[#allocation7 + $0x378] sm:$0xff] }
 0x22f   : > { %1280 = vmatprep.subr.mxu0 %v1184_v7  ;;  %1375 = vmatprep.subr.mxu1 %v3059_v0  ;;  %v1632_v7 = vld [vmem:[#allocation7 + $0x370] sm:$0xff] }
 0x230   : > { %1281 = vmatpush2.msra.mxu0 %v1183_v8  ;;  %1376 = vmatpush2.msra.mxu1 %v1185_v11  ;;  %v1631_v8 = vld [vmem:[#allocation7 + $0x368] sm:$0xff]  ;;  %v1630_v11 = vld [vmem:[#allocation7 + $0x360] sm:$0xff] }
 0x231   : > { %1282 = vmatprep.subr.mxu0 %v1181_v12  ;;  %1377 = vmatprep.subr.mxu1 %v3059_v0  ;;  %v1629_v12 = vld [vmem:[#allocation7 + $0x358] sm:$0xff] }
 0x232   : > { %1283 = vmatpush2.msra.mxu0 %v1180_v14  ;;  %1378 = vmatpush2.msra.mxu1 %v1182_v15  ;;  %v1628_v14 = vld [vmem:[#allocation7 + $0x350] sm:$0xff]  ;;  %v1627_v15 = vld [vmem:[#allocation7 + $0x348] sm:$0xff] }
 0x233   : > { %1285 = vmatmul.mubr.f32.vlgmr.msra.gmra.mxu0 %v3296_v37  ;;  %1380 = vmatmul.mubr.f32.vlgmr.msra.gmra.mxu1 %v3296_v37  ;;  %v1617_v37 = vld [vmem:[#allocation7 + $0x2f8] sm:$0xff] }
 0x234   : > { %2707 = vmatprep.mubr.msk.f32.mxu0 %vm365_vm1, %v3323_v58  ;;  %2712 = vmatprep.mubr.msk.f32.mxu1 %vm365_vm1, %v3323_v58  ;;  %v1204_v58 = vsel %vm1186_vm3, %v1199_v61, %v1203_v19  ;;  %v1612_v61 = vld [vmem:[#allocation7 + $0x2d0] sm:$0xff] }
 0x235   : > { %1716 = vmatprep.subr.mxu0 %v1621_v16  ;;  %1833 = vmatprep.subr.mxu1 %v1657_v47  ;;  %v1655_v16 = vld [vmem:[#allocation7 + $0x428] sm:$0xff] }
 0x236   : > { %1717 = vmatpush1.msra.mxu0 %v1620_v17  ;;  %1834 = vmatpush1.msra.mxu1 %v1656_v48  ;;  %v1626_v17 = vld [vmem:[#allocation7 + $0x340] sm:$0xff] }
 0x237   : > { %1291 = vmatmul.mubr.f32.gmra.mxu0 %v3314_v52  ;;  %1385 = vmatmul.mubr.f32.gmra.mxu1 %v3314_v52  ;;  %v1615_v52 = vld [vmem:[#allocation7 + $0x2e8] sm:$0xff] }
 0x238   : > { %2708 = vmatprep.mubr.msk.f32.mxu0 %vm365_vm1, %v3345_v9  ;;  %2713 = vmatprep.mubr.msk.f32.mxu1 %vm365_vm1, %v3345_v9  ;;  %v1614_v9 = vld [vmem:[#allocation7 + $0x2e0] sm:$0xff] }
 0x239   : > { %1718 = vmatprep.subr.mxu0 %v1619_v18  ;;  %1835 = vmatprep.subr.mxu1 %v1655_v16  ;;  %v1654_v18 = vld [vmem:[#allocation7 + $0x420] sm:$0xff] }
 0x23a   : > { %1719 = vmatpush1.msra.mxu0 %v1618_v20  ;;  %1836 = vmatpush1.msra.mxu1 %v1654_v18  ;;  %v1624_v20 = vld [vmem:[#allocation7 + $0x330] sm:$0xff] }
 0x23b   : > { %1297 = vmatmul.mubr.f32.gmra.mxu0 %v3332_v1  ;;  %1390 = vmatmul.mubr.f32.gmra.mxu1 %v3332_v1  ;;  %v1611_v1 = vld [vmem:[#allocation7 + $0x2c8] sm:$0xff] }
 0x23c   : > { %2709 = vmatprep.mubr.msk.f32.mxu0 %vm365_vm1, %v1204_v58  ;;  %2714 = vmatprep.mubr.msk.f32.mxu1 %vm365_vm1, %v1204_v58  ;;  %v1623_v58 = vld [vmem:[#allocation7 + $0x328] sm:$0xff] }
 0x23d   : > { %1720 = vmatprep.subr.mxu0 %v1617_v37  ;;  %v1552_v37 = vld [vmem:[#allocation7 + $0xf8] sm:$0xff] }
 0x23e   : > { %1721 = vmatpush1.msra.mxu0 %v1616_v10  ;;  %1902 = vmatprep.subr.mxu1 %v1552_v37  ;;  %v1622_v10 = vld [vmem:[#allocation7 + $0x320] sm:$0xff] }
 0x23f   : > { %1303 = vmatmul.mubr.f32.gmra.mxu0 %v3353_v13  ;;  %1395 = vmatmul.mubr.f32.gmra.mxu1 %v3353_v13  ;;  %v1609_v13 = vld [vmem:[#allocation7 + $0x2b8] sm:$0xff] }
 0x240   : > { %2710 = vmatprep.mubr.msk.f32.mxu0 %vm365_vm1, %v1203_v19  ;;  %2715 = vmatprep.mubr.msk.f32.mxu1 %vm365_vm1, %v1203_v19  ;;  %v1625_v19 = vld [vmem:[#allocation7 + $0x338] sm:$0xff] }
 0x241   : > { %1722 = vmatprep.subr.mxu0 %v1615_v52  ;;  %v2112_v52 = vld [vmem:[#allocation7 + $0x538] sm:$0xff] }
 0x242   : > { %1723 = vmatpush1.msra.mxu0 %v1614_v9 }
 0x243   : > { %1309 = vmatmul.mubr.f32.gmra.mxu0 %v3340_v6  ;;  %1400 = vmatmul.mubr.f32.gmra.mxu1 %v3340_v6  ;;  %v1603_v6 = vld [vmem:[#allocation7 + $0x288] sm:$0xff] }
 0x244   : > { %1724 = vmatprep.subr.mxu0 %v1613_v59  ;;  %1869 = vmatprep.mubr.f32.mxu1 %v3059_v0 }
 0x245   : > { %1725 = vmatpush1.msra.mxu0 %v1612_v61 }
 0x246   : > { %1726 = vmatprep.subr.mxu0 %v1611_v1 }
 0x247   : > { %1727 = vmatpush1.msra.mxu0 %v1610_v26 }
 0x248   : > { %1728 = vmatprep.subr.mxu0 %v1609_v13 }
 0x249   : > { %1729 = vmatpush1.msra.mxu0 %v1608_v21 }
 0x24a   : > { %1730 = vmatprep.subr.mxu0 %v1607_v22 }
 0x24b   : > { %1731 = vmatpush1.msra.mxu0 %v1606_v33 }
 0x24c   : > { %1732 = vmatprep.subr.mxu0 %v1605_v23 }
 0x24d   : > { %1733 = vmatpush1.msra.mxu0 %v1604_v24 }
 0x24e   : > { %1734 = vmatprep.subr.mxu0 %v1603_v6 }
 0x24f   : > { %1735 = vmatpush1.msra.mxu0 %v1602_v28 }
 0x250   : > { %1736 = vmatprep.subr.mxu0 %v1601_v25 }
 0x251   : > { %1737 = vmatpush1.msra.mxu0 %v1600_v29 }
 0x252   : > { %1738 = vmatprep.subr.mxu0 %v1599_v45 }
 0x253   : > { %1739 = vmatpush1.msra.mxu0 %v1598_v30 }
 0x254   : > { %1740 = vmatprep.subr.mxu0 %v1597_v31 }
 0x255   : > { %1741 = vmatpush1.msra.mxu0 %v1596_v39 }
 0x256   : > { %1742 = vmatprep.subr.mxu0 %v1595_v32 }
 0x257   : > { %1743 = vmatpush1.msra.mxu0 %v1594_v34 }
 0x258   : > { %1744 = vmatprep.subr.mxu0 %v1593_v35 }
 0x259   : > { %1745 = vmatpush1.msra.mxu0 %v1592_v36 }
 0x25a   : > { %1746 = vmatprep.subr.mxu0 %v1591_v38 }
 0x25b   : > { %1747 = vmatpush1.msra.mxu0 %v1590_v54 }
 0x25c   : > { %1748 = vmatprep.subr.mxu0 %v1653_v40 }
 0x25d   : > { %1749 = vmatpush2.msra.mxu0 %v1652_v41 }
 0x25e   : > { %1750 = vmatprep.subr.mxu0 %v1651_v42 }
 0x25f   : > { %1751 = vmatpush2.msra.mxu0 %v1650_v43 }
 0x260   : > { %1752 = vmatprep.subr.mxu0 %v1649_v46 }
 0x261   : > { %1753 = vmatpush2.msra.mxu0 %v1648_v4 }
 0x262   : > { %1754 = vmatprep.subr.mxu0 %v1647_v49 }
 0x263   : > { %1755 = vmatpush2.msra.mxu0 %v1646_v50 }
 0x264   : > { %1756 = vmatprep.subr.mxu0 %v1645_v51 }
 0x265   : > { %1757 = vmatpush2.msra.mxu0 %v1644_v53 }
 0x266   : > { %1758 = vmatprep.subr.mxu0 %v1643_v44  ;;  %v1422_v44 = vlaneseq }
 0x267   : > { %1759 = vmatpush2.msra.mxu0 %v1642_v27 }
 0x268   : > { %1760 = vmatprep.subr.mxu0 %v1641_v55  ;;  %v3475_v55 = vshrl.u32 %v1422_v44, 7 }
 0x269   : > { %1761 = vmatpush2.msra.mxu0 %v1640_v56 }
 0x26a   : > { %1762 = vmatprep.subr.mxu0 %v1639_v57  ;;  %v1432_v57 = vsub.s32 2, %v3475_v55 }
 0x26b   : > { %1763 = vmatpush2.msra.mxu0 %v1638_v60  ;;  %v1420_v60 = vld [vmem:[%s3865_s4] sm:$0x7] }
 0x26c   : > { %1764 = vmatprep.subr.mxu0 %v1637_v62  ;;  %v1424_v62 = vsub.s32 0, %v3475_v55 }
 0x26d   : > { %1765 = vmatpush2.msra.mxu0 %v1636_v63  ;;  %v1428_v63 = vsub.s32 1, %v3475_v55 }
 0x26e   : > { %1766 = vmatprep.subr.mxu0 %v1635_v2 }
 0x26f   : > { %1767 = vmatpush2.msra.mxu0 %v1634_v3 }
 0x270   : > { %1768 = vmatprep.subr.mxu0 %v1633_v5 }
 0x271   : > { %1769 = vmatpush2.msra.mxu0 %v1632_v7  ;;  %v3483_v7 = vrot.slane %v1420_v60, %v1432_v57 }
 0x272   : > { %1770 = vmatprep.subr.mxu0 %v1631_v8 }
 0x273   : > { %1771 = vmatpush2.msra.mxu0 %v1630_v11  ;;  %v3487_v11 = vrot.slane %v1420_v60, %v1424_v62 }
 0x274   : > { %1772 = vmatprep.subr.mxu0 %v1629_v12  ;;  %v3490_v12 = vadd.s32 4294967295, %v3475_v55 }
 0x275   : > { %1773 = vmatpush2.msra.mxu0 %v1628_v14 }
 0x276   : > { %1774 = vmatprep.subr.mxu0 %v1627_v15  ;;  %v3494_v15 = vrot.slane %v1420_v60, %v1428_v63  ;;  %vm1481_vm5 = vcmp.ge.s32.totalorder %v3490_v12, 0  ;;  %v1585_v12 = vld [vmem:[#allocation7 + $0x200] sm:$0xff] }
 0x277   : > { %1775 = vmatpush2.msra.mxu0 %v1626_v17 }
 0x278   : > { %1776 = vmatprep.subr.mxu0 %v1625_v19  ;;  %v1474_v19 = vadd.s32 32, %v3475_v55 }
 0x279   : > { %1777 = vmatpush2.msra.mxu0 %v1624_v20 }
 0x27a   : > { %1778 = vmatprep.subr.mxu0 %v1623_v58 }
 0x27b   : > { %1779 = vmatpush2.msra.mxu0 %v1622_v10 }
 0x27c   : > { %2192 = vmatprep.subr.mxu0 %v2112_v52 }
 0x298   : > { %v912_v9 = vpop.f32.mrf.mxu1  ;;  %v817_v21 = vpop.f32.mrf.mxu0 }
 0x29a   : > { %v914_v59 = vpop.f32.mrf.mxu1  ;;  %v819_v23 = vpop.f32.mrf.mxu0 }
 0x29e   : > { %v917_v61 = vpop.f32.mrf.mxu1  ;;  %v823_v6 = vpop.f32.mrf.mxu0 }
 0x2a0   : > { %v919_v1 = vpop.f32.mrf.mxu1  ;;  %v825_v25 = vpop.f32.mrf.mxu0 }
 0x2a4   : > { %v3459_v26 = vpop.f32.mrf.mxu1  ;;  %v829_v29 = vpop.f32.mrf.mxu0 }
 0x2a6   : > { %v924_v13 = vpop.f32.mrf.mxu1  ;;  %v3465_v45 = vpop.f32.mrf.mxu0 }
 0x2aa   : > { %v3461_v22 = vpop.f32.mrf.mxu1  ;;  %v3467_v30 = vpop.f32.mrf.mxu0 }
 0x2ac   : > { %v929_v33 = vpop.f32.mrf.mxu1  ;;  %v3469_v31 = vpop.f32.mrf.mxu0 }
 0x2b0   : > { %v3463_v24 = vpop.f32.mrf.mxu1  ;;  %v3471_v32 = vpop.f32.mrf.mxu0 }
 0x2b2   : > { %v934_v28 = vpop.f32.mrf.mxu1  ;;  %v3473_v35 = vpop.f32.mrf.mxu0 }
 0x2c5   : > { %v1107_v39 = vpop.f32.mrf.mxu1  ;;  %v1012_v38 = vpop.f32.mrf.mxu0 }
 0x2c6   : > { %v1013_v3 = vadd.f32 %v1012_v38, %v817_v21  ;;  %v1108_v5 = vadd.f32 %v1107_v39, %v912_v9 }
 0x2c7   : > { %v1109_v34 = vpop.f32.mrf.mxu1  ;;  %v1014_v40 = vpop.f32.mrf.mxu0 }
 0x2c8   : > { %v1015_v16 = vadd.f32 %v1014_v40, %v819_v23  ;;  %v3505_v23 = vadd.s32 4294967295, %v1474_v19 }
 0x2ca   : > { %vm1490_vm6 = vcmp.lt.s32.totalorder %v3505_v23, 32  ;;  %v2100_v23 = vld [vmem:[#allocation7 + $0x4d8] sm:$0xff] }
 0x2cb   : > { %v1112_v36 = vpop.f32.mrf.mxu1  ;;  %v1018_v43 = vpop.f32.mrf.mxu0 }
 0x2cc   : > { %v1019_v58 = vadd.f32 %v1018_v43, %v823_v6  ;;  %v1113_v9 = vadd.f32 %v1112_v36, %v917_v61 }
 0x2cd   : > { %v1114_v54 = vpop.f32.mrf.mxu1  ;;  %v1020_v47 = vpop.f32.mrf.mxu0 }
 0x2ce   : > { %v1021_v28 = vadd.f32 %v1020_v47, %v825_v25 }
 0x2d1   : > { %v1117_v41 = vpop.f32.mrf.mxu1  ;;  %v1024_v48 = vpop.f32.mrf.mxu0 }
 0x2d2   : > { %v1025_v39 = vadd.f32 %v1024_v48, %v829_v29  ;;  %v1118_v61 = vadd.f32 %v1117_v41, %v3459_v26 }
 0x2d3   : > { %v1119_v42 = vpop.f32.mrf.mxu1  ;;  %v1026_v51 = vpop.f32.mrf.mxu0 }
 0x2d4   : > { %v1027_v36 = vadd.f32 %v1026_v51, %v3465_v45 }
 0x2d7   : > { %v1122_v46 = vpop.f32.mrf.mxu1  ;;  %v1030_v53 = vpop.f32.mrf.mxu0 }
 0x2d8   : > { %v1031_v43 = vadd.f32 %v1030_v53, %v3467_v30 }
 0x2d9   : > { %v1124_v4 = vpop.f32.mrf.mxu1  ;;  %v1032_v27 = vpop.f32.mrf.mxu0 }
 0x2da   : > { %v1123_v4 = vadd.f32 %v1122_v46, %v3461_v22 }
 0x2dd   : > { %v1127_v49 = vpop.f32.mrf.mxu1  ;;  %v1036_v56 = vpop.f32.mrf.mxu0 }
 0x2de   : > { %v1037_v48 = vadd.f32 %v1036_v56, %v3471_v32  ;;  %v1128_v26 = vadd.f32 %v1127_v49, %v3463_v24 }
 0x2df   : > { %v1129_v50 = vpop.f32.mrf.mxu1  ;;  %v1038_v2 = vpop.f32.mrf.mxu0 }
 0x2e0   : > { %v1033_v50 = vadd.f32 %v1032_v27, %v3469_v31  ;;  %v1039_v51 = vadd.f32 %v1038_v2, %v3473_v35 }
 0x2f3   : > { %v1286_v8 = vpop.f32.mrf.mxu0  ;;  %v1381_v14 = vpop.f32.mrf.mxu1 }
 0x2f4   : > { %v1405_v17 = vadd.f32 %v1286_v8, %v1013_v3  ;;  %v1407_v18 = vadd.f32 %v1381_v14, %v1108_v5 }
 0x2f5   : > { %v1288_v20 = vpop.f32.mrf.mxu0  ;;  %v1383_v37 = vpop.f32.mrf.mxu1 }
 0x2f6   : > { %v1439_v10 = vadd.f32 %v3483_v7, %v1407_v18  ;;  %v1406_v52 = vadd.f32 %v1288_v20, %v1015_v16  ;;  %v3499_v59 = vadd.f32 %v3487_v11, %v1405_v17 }
 0x2f7   : > { %v1292_v1 = vpop.f32.mrf.mxu0  ;;  %v1386_v13 = vpop.f32.mrf.mxu1 }
 0x2f8   : > { %v3503_v21 = vadd.f32 %v3494_v15, %v1406_v52  ;;  %v1408_v33 = vadd.f32 %v1292_v1, %v1019_v58  ;;  %v1454_v6 = vmax.f32 %v1439_v10, 0.0  ;;  %v1410_v34 = vadd.f32 %v1386_v13, %v1113_v9  ;;  %v1551_v58 = vld [vmem:[#allocation7 + $0xf0] sm:$0xff]  ;;  %v1550_v1 = vld [vmem:[#allocation7 + $0xe8] sm:$0xff] }
 0x2f9   : > { %v1294_v38 = vpop.f32.mrf.mxu0  ;;  %v1388_v54 = vpop.f32.mrf.mxu1  ;;  %v1452_v25 = vmax.f32 %v3499_v59, 0.0 }
 0x2fa   : > { %v1453_v40 = vmax.f32 %v3503_v21, 0.0  ;;  %v1440_v42 = vadd.f32 %v3487_v11, %v1408_v33  ;;  %v1442_v45 = vadd.f32 %v3483_v7, %v1410_v34  ;;  %v1409_v41 = vadd.f32 %v1294_v38, %v1021_v28  ;;  %v1549_v54 = vld [vmem:[#allocation7 + $0xe0] sm:$0xff] }
 0x2fb   : > { %v1298_v29 = vpop.f32.mrf.mxu0  ;;  %v1391_v47 = vpop.f32.mrf.mxu1  ;;  %v3521_v30 = vsel %vm1481_vm5, %v1454_v6, 0.0  ;;  %v3538_v44 = vsel %vm1481_vm5, %v1452_v25, 0.0  ;;  %v1533_v21 = vld [vmem:[#allocation7 + $0x60] sm:$0xff] }
 0x2fc   : > { %v1411_v22 = vadd.f32 %v1298_v29, %v1025_v39  ;;  %v1413_v46 = vadd.f32 %v1391_v47, %v1118_v61  ;;  %v3527_v32 = vsel %vm1481_vm5, %v1453_v40, 0.0  ;;  %v3529_v24 = vmax.f32 %v1440_v42, 0.0 }
 0x2fd   : > { %v1300_v31 = vpop.f32.mrf.mxu0  ;;  %v1393_v53 = vpop.f32.mrf.mxu1  ;;  %v3531_v49 = vmax.f32 %v1442_v45, 0.0  ;;  %v1441_v35 = vadd.f32 %v3494_v15, %v1409_v41  ;;  %v1679_v3 = vrot.slane %v3521_v30, 1  ;;  %v1676_v16 = vrot.slane %v3527_v32, 1  ;;  %v2111_v45 = vld [vmem:[#allocation7 + $0x530] sm:$0xff] }
 0x2fe   : > { %v1443_v27 = vadd.f32 %v3487_v11, %v1411_v22  ;;  %v1445_v56 = vadd.f32 %v3483_v7, %v1413_v46  ;;  %v1412_v57 = vadd.f32 %v1300_v31, %v1027_v36  ;;  %v1674_v10 = vrot.slane %v3529_v24, 1 }
 0x2ff   : > { %v1304_v60 = vpop.f32.mrf.mxu0  ;;  %v1396_v2 = vpop.f32.mrf.mxu1  ;;  %v1680_v5 = vrot.slane %v3531_v49, 1  ;;  %v3544_v8 = vmax.f32 %v1441_v35, 0.0  ;;  %v1673_v61 = vrot.slane %v3538_v44, 1 }
 0x300   : > { %v1414_v14 = vadd.f32 %v1304_v60, %v1031_v43  ;;  %v3547_v17 = vmax.f32 %v1445_v56, 0.0  ;;  %v1444_v18 = vadd.f32 %v3494_v15, %v1412_v57  ;;  %v1416_v19 = vadd.f32 %v1396_v2, %v1123_v4  ;;  %v1548_v4 = vld [vmem:[#allocation7 + $0xd8] sm:$0xff]  ;;  %v1546_v57 = vld [vmem:[#allocation7 + $0xc8] sm:$0xff]  ;;  %v2109_v60 = vld [vmem:[#allocation7 + $0x520] sm:$0xff] }
 0x301   : > { %v1306_v20 = vpop.f32.mrf.mxu0  ;;  %v1398_v37 = vpop.f32.mrf.mxu1  ;;  %v1681_v9 = vsel %vm717_vm4, %v1679_v3, %v1680_v5  ;;  %v1677_v13 = vrot.slane %v3544_v8, 1  ;;  %v3553_v33 = vmax.f32 %v1443_v27, 0.0  ;;  %v1547_v27 = vld [vmem:[#allocation7 + $0xd0] sm:$0xff] }
 0x302   : > { %v1415_v52 = vadd.f32 %v1306_v20, %v1033_v50  ;;  %v1686_v28 = vrot.slane %v3547_v17, 1  ;;  %v3556_v39 = vmax.f32 %v1444_v18, 0.0  ;;  %v1448_v6 = vadd.f32 %v3483_v7, %v1416_v19  ;;  %2716 = vmatmul.mubr.msk.f32.vlgmr.msra.gmra.mxu1 %vm365_vm1, %v1681_v9  ;;  %v2108_v18 = vld [vmem:[#allocation7 + $0x518] sm:$0xff]  ;;  %v2107_v9 = vld [vmem:[#allocation7 + $0x510] sm:$0xff] }
 0x303   : > { %v1310_v34 = vpop.f32.mrf.mxu0  ;;  %v1401_v38 = vpop.f32.mrf.mxu1  ;;  %v1446_v36 = vadd.f32 %v3487_v11, %v1414_v14  ;;  %1903 = vmatpush1.msra.mxu1 %v1551_v58  ;;  %1875 = vmatprep.mubr.f32.mxu1 %v3059_v0  ;;  %v1678_v47 = vsel %vm717_vm4, %v1676_v16, %v1677_v13  ;;  %v1682_v3 = vrot.slane %v3553_v33, 1  ;;  %v1544_v37 = vld [vmem:[#allocation7 + $0xb8] sm:$0xff]  ;;  %v2158_v59 = vrot.slane %v3553_v33, 2 }
 0x304   : > { %v1447_v42 = vadd.f32 %v3494_v15, %v1415_v52  ;;  %v1419_v43 = vadd.f32 %v1401_v38, %v1128_v26  ;;  %v3564_v50 = vmax.f32 %v1448_v6, 0.0  ;;  %1904 = vmatprep.subr.mxu1 %v1550_v1  ;;  %v1417_v29 = vadd.f32 %v1310_v34, %v1037_v48  ;;  %1780 = vmatprep.mubr.f32.mxu0 %v1678_v47  ;;  %v2110_v48 = vld [vmem:[#allocation7 + $0x528] sm:$0xff]  ;;  %v1543_v1 = vld [vmem:[#allocation7 + $0xb0] sm:$0xff]  ;;  %v2105_v34 = vld [vmem:[#allocation7 + $0x500] sm:$0xff] }
 0x305   : > { %v1312_v41 = vpop.f32.mrf.mxu0  ;;  %v1403_v22 = vpop.f32.mrf.mxu1  ;;  %v1687_v46 = vsel %vm717_vm4, %v1680_v5, %v1686_v28  ;;  %1905 = vmatpush1.msra.mxu1 %v1549_v54  ;;  %v1675_v26 = vsel %vm717_vm4, %v1673_v61, %v1674_v10  ;;  %v1684_v2 = vrot.slane %v3556_v39, 1  ;;  %v3580_v14 = vmax.f32 %v1446_v36, 0.0  ;;  %v1542_v6 = vld [vmem:[#allocation7 + $0xa8] sm:$0xff]  ;;  %v1541_v36 = vld [vmem:[#allocation7 + $0xa0] sm:$0xff] }
 0x306   : > { %v3568_v31 = vmax.f32 %v1447_v42, 0.0  ;;  %v1451_v53 = vadd.f32 %v3483_v7, %v1419_v43  ;;  %v1418_v35 = vadd.f32 %v1312_v41, %v1039_v51  ;;  %v1692_v56 = vrot.slane %v3564_v50, 1  ;;  %1781 = vmatmul.mubr.f32.vlgmr.msra.gmra.mxu0 %v1675_v26  ;;  %1906 = vmatprep.subr.mxu1 %v1548_v4  ;;  %v1545_v51 = vld [vmem:[#allocation7 + $0xc0] sm:$0xff]  ;;  %v2104_v42 = vld [vmem:[#allocation7 + $0x4f8] sm:$0xff]  ;;  %v2103_v4 = vld [vmem:[#allocation7 + $0x4f0] sm:$0xff] }
 0x307   : > { %2193 = vmatpush1.msra.mxu0 %v2111_v45  ;;  %2717 = vmatmul.mubr.msk.f32.gmra.mxu1 %vm365_vm1, %v1687_v46  ;;  %v1685_v16 = vsel %vm717_vm4, %v1677_v13, %v1684_v2  ;;  %v1449_v19 = vadd.f32 %v3487_v11, %v1417_v29  ;;  %v1683_v52 = vsel %vm717_vm4, %v1674_v10, %v1682_v3  ;;  %v2106_v13 = vld [vmem:[#allocation7 + $0x508] sm:$0xff]  ;;  %v1688_v38 = vrot.slane %v3580_v14, 1  ;;  %v1540_v43 = vld [vmem:[#allocation7 + $0x98] sm:$0xff]  ;;  %v1539_v45 = vld [vmem:[#allocation7 + $0x90] sm:$0xff] }
 0x308   : > { %v1466_v7 = vmax.f32 %v1451_v53, 0.0  ;;  %v1450_v5 = vadd.f32 %v3494_v15, %v1418_v35  ;;  %1907 = vmatpush1.msra.mxu1 %v1547_v27  ;;  %2194 = vmatprep.subr.mxu0 %v2110_v48  ;;  %v1690_v58 = vrot.slane %v3568_v31, 1  ;;  %v1693_v11 = vsel %vm717_vm4, %v1686_v28, %v1692_v56  ;;  %v2102_v22 = vld [vmem:[#allocation7 + $0x4e8] sm:$0xff]  ;;  %v2101_v26 = vld [vmem:[#allocation7 + $0x4e0] sm:$0xff] }
 0x309   : > { %1908 = vmatprep.subr.mxu1 %v1546_v57  ;;  %2195 = vmatpush1.msra.mxu0 %v2109_v60  ;;  %v1464_v54 = vmax.f32 %v1449_v19, 0.0  ;;  %v1689_v47 = vsel %vm717_vm4, %v1682_v3, %v1688_v38  ;;  %v1538_v53 = vld [vmem:[#allocation7 + $0x88] sm:$0xff]  ;;  %v1537_v35 = vld [vmem:[#allocation7 + $0x80] sm:$0xff]  ;;  %v1536_v57 = vld [vmem:[#allocation7 + $0x78] sm:$0xff] }
 0x30a   : > { %v1465_v20 = vmax.f32 %v1450_v5, 0.0  ;;  %v3587_v15 = vsel %vm1490_vm6, %v1466_v7, 0.0  ;;  %1786 = vmatprep.mubr.f32.mxu0 %v1685_v16  ;;  %1909 = vmatpush1.msra.mxu1 %v1545_v51  ;;  %v1691_v28 = vsel %vm717_vm4, %v1684_v2, %v1690_v58  ;;  %v1535_v60 = vld [vmem:[#allocation7 + $0x70] sm:$0xff]  ;;  %v2153_v2 = vrot.slane %v3544_v8, 2  ;;  %v2098_v3 = vld [vmem:[#allocation7 + $0x4c8] sm:$0xff]  ;;  %v2097_v16 = vld [vmem:[#allocation7 + $0x4c0] sm:$0xff] }
 0x30b   : > { %2196 = vmatprep.subr.mxu0 %v2108_v18  ;;  %1787 = vmatmul.mubr.f32.gmra.mxu0 %v1683_v52  ;;  %v1698_v61 = vrot.slane %v3587_v15, 1  ;;  %v3608_v41 = vsel %vm1490_vm6, %v1464_v54, 0.0  ;;  %v1534_v7 = vld [vmem:[#allocation7 + $0x68] sm:$0xff]  ;;  %v2152_v5 = vrot.slane %v3527_v32, 2  ;;  %v2096_v18 = vld [vmem:[#allocation7 + $0x4b8] sm:$0xff]  ;;  %v1531_v32 = vld [vmem:[#allocation7 + $0x50] sm:$0xff] }
 0x30c   : > { %1881 = vmatprep.mubr.f32.mxu1 %v3059_v0  ;;  %1910 = vmatprep.subr.mxu1 %v1544_v37  ;;  %v3600_v10 = vsel %vm1490_vm6, %v1465_v20, 0.0  ;;  %v1694_v27 = vrot.slane %v3608_v41, 1  ;;  %v1532_v19 = vld [vmem:[#allocation7 + $0x58] sm:$0xff]  ;;  %v2095_v20 = vld [vmem:[#allocation7 + $0x4b0] sm:$0xff]  ;;  %v2094_v37 = vld [vmem:[#allocation7 + $0x4a8] sm:$0xff] }
 0x30d   : > { %2197 = vmatpush1.msra.mxu0 %v2107_v9  ;;  %2718 = vmatmul.mubr.msk.f32.gmra.mxu1 %vm365_vm1, %v1693_v11  ;;  %v1696_v29 = vrot.slane %v3600_v10, 1  ;;  %v1699_v46 = vsel %vm717_vm4, %v1692_v56, %v1698_v61  ;;  %v2099_v56 = vld [vmem:[#allocation7 + $0x4d0] sm:$0xff]  ;;  %v2093_v52 = vld [vmem:[#allocation7 + $0x4a0] sm:$0xff]  ;;  %v2092_v11 = vld [vmem:[#allocation7 + $0x498] sm:$0xff] }
 0x30e   : > { %1911 = vmatpush1.msra.mxu1 %v1543_v1  ;;  %2198 = vmatprep.subr.mxu0 %v2106_v13  ;;  %v1695_v51 = vsel %vm717_vm4, %v1688_v38, %v1694_v27  ;;  %v1529_v9 = vld [vmem:[#allocation7 + $0x40] sm:$0xff]  ;;  %v1528_v1 = vld [vmem:[#allocation7 + $0x38] sm:$0xff]  ;;  %v2091_v13 = vld [vmem:[#allocation7 + $0x490] sm:$0xff] }
 0x30f   : > { %1912 = vmatprep.subr.mxu1 %v1542_v6  ;;  %2199 = vmatpush1.msra.mxu0 %v2105_v34  ;;  %v1697_v48 = vsel %vm717_vm4, %v1690_v58, %v1696_v29  ;;  %v1530_v58 = vld [vmem:[#allocation7 + $0x48] sm:$0xff]  ;;  %v1527_v6 = vld [vmem:[#allocation7 + $0x30] sm:$0xff]  ;;  %v2089_v54 = vld [vmem:[#allocation7 + $0x480] sm:$0xff] }
 0x310   : > { %1792 = vmatprep.mubr.f32.mxu0 %v1691_v28  ;;  %1913 = vmatpush1.msra.mxu1 %v1541_v36  ;;  %v2090_v34 = vld [vmem:[#allocation7 + $0x488] sm:$0xff]  ;;  %v1525_v61 = vld [vmem:[#allocation7 + $0x20] sm:$0xff]  ;;  %v2088_v28 = vld [vmem:[#allocation7 + $0x478] sm:$0xff] }
 0x311   : > { %2200 = vmatprep.subr.mxu0 %v2104_v42  ;;  %1793 = vmatmul.mubr.f32.gmra.mxu0 %v1689_v47  ;;  %v1526_v38 = vld [vmem:[#allocation7 + $0x28] sm:$0xff]  ;;  %v1524_v36 = vld [vmem:[#allocation7 + $0x18] sm:$0xff]  ;;  %v2087_v42 = vld [vmem:[#allocation7 + $0x470] sm:$0xff] }
 0x312   : > { %1914 = vmatprep.subr.mxu1 %v1540_v43  ;;  %2201 = vmatpush1.msra.mxu0 %v2103_v4  ;;  %v1523_v43 = vld [vmem:[#allocation7 + $0x10] sm:$0xff]  ;;  %v2086_v4 = vld [vmem:[#allocation7 + $0x468] sm:$0xff]  ;;  %v2085_v47 = vld [vmem:[#allocation7 + $0x460] sm:$0xff] }
 0x313   : > { %1887 = vmatprep.mubr.f32.mxu1 %v3059_v0  ;;  %1915 = vmatpush1.msra.mxu1 %v1539_v45  ;;  %v1522_v29 = vld [vmem:[#allocation7 + $0x8] sm:$0xff]  ;;  %v1521_v45 = vld [vmem:[#allocation7] sm:$0xff] }
 0x314   : > { %2202 = vmatprep.subr.mxu0 %v2102_v22  ;;  %2719 = vmatmul.mubr.msk.f32.gmra.mxu1 %vm365_vm1, %v1699_v46  ;;  %v2084_v22 = vld [vmem:[#allocation7 + $0x458] sm:$0xff]  ;;  %v1582_v27 = vld [vmem:[#allocation7 + $0x1e8] sm:$0xff] }
 0x315   : > { %1916 = vmatprep.subr.mxu1 %v1538_v53  ;;  %2203 = vmatpush1.msra.mxu0 %v2101_v26  ;;  %v1584_v46 = vld [vmem:[#allocation7 + $0x1f8] sm:$0xff]  ;;  %v2083_v53 = vld [vmem:[#allocation7 + $0x450] sm:$0xff] }
 0x316   : > { %1917 = vmatpush1.msra.mxu1 %v1537_v35  ;;  %2720 = vmatprep.mubr.msk.f32.mxu1 %vm1481_vm5, %v1453_v40  ;;  %v2154_v40 = vsel %vm1186_vm3, %v2152_v5, %v2153_v2  ;;  %v1583_v26 = vld [vmem:[#allocation7 + $0x1f0] sm:$0xff]  ;;  %v2082_v35 = vld [vmem:[#allocation7 + $0x448] sm:$0xff] }
 0x317   : > { %2204 = vmatprep.subr.mxu0 %v2100_v23  ;;  %1798 = vmatprep.mubr.f32.mxu0 %v1697_v48  ;;  %v2081_v23 = vld [vmem:[#allocation7 + $0x440] sm:$0xff]  ;;  %v1578_v5 = vld [vmem:[#allocation7 + $0x1c8] sm:$0xff] }
 0x318   : > { %1918 = vmatprep.subr.mxu1 %v1536_v57  ;;  %2205 = vmatpush1.msra.mxu0 %v2099_v56  ;;  %v1581_v48 = vld [vmem:[#allocation7 + $0x1e0] sm:$0xff]  ;;  %v2144_v57 = vld [vmem:[#allocation7 + $0x638] sm:$0xff] }
 0x319   : > { %1799 = vmatmul.mubr.f32.gmra.mxu0 %v1695_v51  ;;  %1919 = vmatpush1.msra.mxu1 %v1535_v60  ;;  %v1580_v56 = vld [vmem:[#allocation7 + $0x1d8] sm:$0xff]  ;;  %v2143_v60 = vld [vmem:[#allocation7 + $0x630] sm:$0xff]  ;;  %v2141_v51 = vld [vmem:[#allocation7 + $0x620] sm:$0xff] }
 0x31a   : > { %2206 = vmatprep.subr.mxu0 %v2098_v3  ;;  %1920 = vmatprep.subr.mxu1 %v1534_v7  ;;  %v1579_v3 = vld [vmem:[#allocation7 + $0x1d0] sm:$0xff]  ;;  %v2142_v7 = vld [vmem:[#allocation7 + $0x628] sm:$0xff] }
 0x31b   : > { %2207 = vmatpush1.msra.mxu0 %v2097_v16  ;;  %2256 = vmatprep.mubr.f32.mxu0 %v2154_v40  ;;  %v1577_v16 = vld [vmem:[#allocation7 + $0x1c0] sm:$0xff]  ;;  %v2139_v40 = vld [vmem:[#allocation7 + $0x610] sm:$0xff] }
 0x31c   : > { %1921 = vmatpush1.msra.mxu1 %v1533_v21  ;;  %2208 = vmatprep.subr.mxu0 %v2096_v18  ;;  %v2140_v21 = vld [vmem:[#allocation7 + $0x618] sm:$0xff] }
 0x31d   : > { %1922 = vmatprep.subr.mxu1 %v1532_v19  ;;  %2209 = vmatpush1.msra.mxu0 %v2095_v20  ;;  %v1576_v18 = vld [vmem:[#allocation7 + $0x1b8] sm:$0xff]  ;;  %v1575_v19 = vld [vmem:[#allocation7 + $0x1b0] sm:$0xff]  ;;  %v2138_v20 = vld [vmem:[#allocation7 + $0x608] sm:$0xff] }
 0x31e   : > { %1923 = vmatpush1.msra.mxu1 %v1531_v32  ;;  %2210 = vmatprep.subr.mxu0 %v2094_v37  ;;  %v1574_v32 = vld [vmem:[#allocation7 + $0x1a8] sm:$0xff]  ;;  %v2137_v37 = vld [vmem:[#allocation7 + $0x600] sm:$0xff] }
 0x31f   : > { %1924 = vmatprep.subr.mxu1 %v1530_v58  ;;  %2211 = vmatpush1.msra.mxu0 %v2093_v52  ;;  %v1573_v58 = vld [vmem:[#allocation7 + $0x1a0] sm:$0xff]  ;;  %v2136_v52 = vld [vmem:[#allocation7 + $0x5f8] sm:$0xff] }
 0x320   : > { %1925 = vmatpush1.msra.mxu1 %v1529_v9  ;;  %2212 = vmatprep.subr.mxu0 %v2092_v11  ;;  %v1572_v9 = vld [vmem:[#allocation7 + $0x198] sm:$0xff]  ;;  %v2135_v11 = vld [vmem:[#allocation7 + $0x5f0] sm:$0xff] }
 0x321   : > { %1926 = vmatprep.subr.mxu1 %v1528_v1  ;;  %2213 = vmatpush1.msra.mxu0 %v2091_v13  ;;  %v1571_v1 = vld [vmem:[#allocation7 + $0x190] sm:$0xff]  ;;  %v2134_v13 = vld [vmem:[#allocation7 + $0x5e8] sm:$0xff] }
 0x322   : > { %1927 = vmatpush1.msra.mxu1 %v1527_v6  ;;  %2214 = vmatprep.subr.mxu0 %v2090_v34  ;;  %v1570_v6 = vld [vmem:[#allocation7 + $0x188] sm:$0xff]  ;;  %v2133_v34 = vld [vmem:[#allocation7 + $0x5e0] sm:$0xff] }
 0x323   : > { %1928 = vmatprep.subr.mxu1 %v1526_v38  ;;  %2215 = vmatpush1.msra.mxu0 %v2089_v54  ;;  %v1569_v38 = vld [vmem:[#allocation7 + $0x180] sm:$0xff]  ;;  %v2132_v54 = vld [vmem:[#allocation7 + $0x5d8] sm:$0xff] }
 0x324   : > { %1929 = vmatpush1.msra.mxu1 %v1525_v61  ;;  %2216 = vmatprep.subr.mxu0 %v2088_v28  ;;  %v1568_v61 = vld [vmem:[#allocation7 + $0x178] sm:$0xff]  ;;  %v2131_v28 = vld [vmem:[#allocation7 + $0x5d0] sm:$0xff] }
 0x325   : > { %1930 = vmatprep.subr.mxu1 %v1524_v36  ;;  %2217 = vmatpush1.msra.mxu0 %v2087_v42  ;;  %v1567_v36 = vld [vmem:[#allocation7 + $0x170] sm:$0xff]  ;;  %v2130_v42 = vld [vmem:[#allocation7 + $0x5c8] sm:$0xff] }
 0x326   : > { %1931 = vmatpush1.msra.mxu1 %v1523_v43  ;;  %2218 = vmatprep.subr.mxu0 %v2086_v4  ;;  %v1566_v43 = vld [vmem:[#allocation7 + $0x168] sm:$0xff]  ;;  %v2129_v4 = vld [vmem:[#allocation7 + $0x5c0] sm:$0xff] }
 0x327   : > { %1932 = vmatprep.subr.mxu1 %v1522_v29  ;;  %2219 = vmatpush1.msra.mxu0 %v2085_v47  ;;  %v1565_v29 = vld [vmem:[#allocation7 + $0x160] sm:$0xff]  ;;  %v2128_v47 = vld [vmem:[#allocation7 + $0x5b8] sm:$0xff] }
 0x328   : > { %1933 = vmatpush1.msra.mxu1 %v1521_v45  ;;  %2220 = vmatprep.subr.mxu0 %v2084_v22  ;;  %v1564_v45 = vld [vmem:[#allocation7 + $0x158] sm:$0xff]  ;;  %v2127_v22 = vld [vmem:[#allocation7 + $0x5b0] sm:$0xff] }
 0x329   : > { %1934 = vmatprep.subr.mxu1 %v1584_v46  ;;  %2221 = vmatpush1.msra.mxu0 %v2083_v53  ;;  %v1563_v46 = vld [vmem:[#allocation7 + $0x150] sm:$0xff]  ;;  %v2126_v53 = vld [vmem:[#allocation7 + $0x5a8] sm:$0xff] }
 0x32a   : > { %1935 = vmatpush2.msra.mxu1 %v1583_v26  ;;  %2222 = vmatprep.subr.mxu0 %v2082_v35  ;;  %v1562_v26 = vld [vmem:[#allocation7 + $0x148] sm:$0xff]  ;;  %v2125_v35 = vld [vmem:[#allocation7 + $0x5a0] sm:$0xff] }
 0x32b   : > { %1936 = vmatprep.subr.mxu1 %v1582_v27  ;;  %2223 = vmatpush1.msra.mxu0 %v2081_v23  ;;  %v1561_v27 = vld [vmem:[#allocation7 + $0x140] sm:$0xff]  ;;  %v2124_v23 = vld [vmem:[#allocation7 + $0x598] sm:$0xff] }
 0x32c   : > { %1937 = vmatpush2.msra.mxu1 %v1581_v48  ;;  %2224 = vmatprep.subr.mxu0 %v2144_v57  ;;  %v1560_v48 = vld [vmem:[#allocation7 + $0x138] sm:$0xff]  ;;  %v2123_v57 = vld [vmem:[#allocation7 + $0x590] sm:$0xff] }
 0x32d   : > { %1938 = vmatprep.subr.mxu1 %v1580_v56  ;;  %2225 = vmatpush2.msra.mxu0 %v2143_v60  ;;  %v1559_v56 = vld [vmem:[#allocation7 + $0x130] sm:$0xff]  ;;  %v2122_v60 = vld [vmem:[#allocation7 + $0x588] sm:$0xff] }
 0x32e   : > { %1939 = vmatpush2.msra.mxu1 %v1579_v3  ;;  %2226 = vmatprep.subr.mxu0 %v2142_v7  ;;  %v1558_v3 = vld [vmem:[#allocation7 + $0x128] sm:$0xff]  ;;  %v2121_v7 = vld [vmem:[#allocation7 + $0x580] sm:$0xff] }
 0x32f   : > { %1940 = vmatprep.subr.mxu1 %v1578_v5  ;;  %2227 = vmatpush2.msra.mxu0 %v2141_v51  ;;  %v1557_v5 = vld [vmem:[#allocation7 + $0x120] sm:$0xff]  ;;  %v2120_v51 = vld [vmem:[#allocation7 + $0x578] sm:$0xff] }
 0x330   : > { %1941 = vmatpush2.msra.mxu1 %v1577_v16  ;;  %2228 = vmatprep.subr.mxu0 %v2140_v21  ;;  %v1556_v16 = vld [vmem:[#allocation7 + $0x118] sm:$0xff]  ;;  %v2119_v21 = vld [vmem:[#allocation7 + $0x570] sm:$0xff] }
 0x331   : > { %1942 = vmatprep.subr.mxu1 %v1576_v18  ;;  %2229 = vmatpush2.msra.mxu0 %v2139_v40  ;;  %v1555_v18 = vld [vmem:[#allocation7 + $0x110] sm:$0xff]  ;;  %v2118_v40 = vld [vmem:[#allocation7 + $0x568] sm:$0xff] }
 0x332   : > { %1943 = vmatpush2.msra.mxu1 %v1575_v19  ;;  %2230 = vmatprep.subr.mxu0 %v2138_v20  ;;  %v1554_v19 = vld [vmem:[#allocation7 + $0x108] sm:$0xff]  ;;  %v2117_v20 = vld [vmem:[#allocation7 + $0x560] sm:$0xff] }
 0x333   : > { %1944 = vmatprep.subr.mxu1 %v1574_v32  ;;  %2231 = vmatpush2.msra.mxu0 %v2137_v37  ;;  %v1553_v32 = vld [vmem:[#allocation7 + $0x100] sm:$0xff]  ;;  %v2116_v37 = vld [vmem:[#allocation7 + $0x558] sm:$0xff] }
 0x334   : > { %1945 = vmatpush2.msra.mxu1 %v1573_v58  ;;  %2232 = vmatprep.subr.mxu0 %v2136_v52  ;;  %v1588_v58 = vld [vmem:[#allocation7 + $0x218] sm:$0xff]  ;;  %v2115_v52 = vld [vmem:[#allocation7 + $0x550] sm:$0xff] }
 0x335   : > { %1946 = vmatprep.subr.mxu1 %v1572_v9  ;;  %2233 = vmatpush2.msra.mxu0 %v2135_v11  ;;  %v2150_v9 = vrot.slane %v3529_v24, 2  ;;  %v1587_v11 = vld [vmem:[#allocation7 + $0x210] sm:$0xff] }
 0x336   : > { %1947 = vmatpush2.msra.mxu1 %v1571_v1  ;;  %2234 = vmatprep.subr.mxu0 %v2134_v13  ;;  %v2114_v1 = vld [vmem:[#allocation7 + $0x548] sm:$0xff]  ;;  %v2113_v13 = vld [vmem:[#allocation7 + $0x540] sm:$0xff] }
 0x337   : > { %1948 = vmatprep.subr.mxu1 %v1570_v6  ;;  %2235 = vmatpush2.msra.mxu0 %v2133_v34  ;;  %v2160_v6 = vrot.slane %v3556_v39, 2  ;;  %v1586_v34 = vld [vmem:[#allocation7 + $0x208] sm:$0xff] }
 0x338   : > { %1949 = vmatpush2.msra.mxu1 %v1569_v38  ;;  %2236 = vmatprep.subr.mxu0 %v2132_v54  ;;  %v2149_v38 = vrot.slane %v3538_v44, 2  ;;  %v2166_v44 = vrot.slane %v3568_v31, 2 }
 0x339   : > { %1950 = vmatprep.subr.mxu1 %v1568_v61  ;;  %2237 = vmatpush2.msra.mxu0 %v2131_v28  ;;  %v2148_v61 = vld [vmem:[#allocation7 + $0x658] sm:$0xff]  ;;  %v2159_v28 = vsel %vm1186_vm3, %v2150_v9, %v2158_v59 }
 0x33a   : > { %1951 = vmatpush2.msra.mxu1 %v1567_v36  ;;  %2238 = vmatprep.subr.mxu0 %v2130_v42  ;;  %v2151_v54 = vsel %vm1186_vm3, %v2149_v38, %v2150_v9  ;;  %v2164_v36 = vrot.slane %v3580_v14, 2  ;;  %v2172_v42 = vrot.slane %v3600_v10, 2  ;;  %v2147_v10 = vld [vmem:[#allocation7 + $0x650] sm:$0xff] }
 0x33b   : > { %1952 = vmatprep.subr.mxu1 %v1566_v43  ;;  %2239 = vmatpush2.msra.mxu0 %v2129_v4  ;;  %v2146_v43 = vld [vmem:[#allocation7 + $0x648] sm:$0xff]  ;;  %v2162_v4 = vrot.slane %v3547_v17, 2 }
 0x33c   : > { %1953 = vmatpush2.msra.mxu1 %v1565_v29  ;;  %2240 = vmatprep.subr.mxu0 %v2128_v47  ;;  %v2168_v47 = vrot.slane %v3564_v50, 2 }
 0x33d   : > { %1954 = vmatprep.subr.mxu1 %v1564_v45  ;;  %2241 = vmatpush2.msra.mxu0 %v2127_v22 }
 0x33e   : > { %1955 = vmatpush2.msra.mxu1 %v1563_v46  ;;  %2242 = vmatprep.subr.mxu0 %v2126_v53 }
 0x33f   : > { %1956 = vmatprep.subr.mxu1 %v1562_v26  ;;  %2243 = vmatpush2.msra.mxu0 %v2125_v35 }
 0x340   : > { %1957 = vmatpush2.msra.mxu1 %v1561_v27  ;;  %2244 = vmatprep.subr.mxu0 %v2124_v23 }
 0x341   : > { %1958 = vmatprep.subr.mxu1 %v1560_v48  ;;  %2245 = vmatpush2.msra.mxu0 %v2123_v57 }
 0x342   : > { %1959 = vmatpush2.msra.mxu1 %v1559_v56  ;;  %2246 = vmatprep.subr.mxu0 %v2122_v60 }
 0x343   : > { %1960 = vmatprep.subr.mxu1 %v1558_v3  ;;  %2247 = vmatpush2.msra.mxu0 %v2121_v7 }
 0x344   : > { %1961 = vmatpush2.msra.mxu1 %v1557_v5  ;;  %2248 = vmatprep.subr.mxu0 %v2120_v51 }
 0x345   : > { %1962 = vmatprep.subr.mxu1 %v1556_v16  ;;  %2249 = vmatpush2.msra.mxu0 %v2119_v21 }
 0x346   : > { %1963 = vmatpush2.msra.mxu1 %v1555_v18  ;;  %2250 = vmatprep.subr.mxu0 %v2118_v40 }
 0x347   : > { %1964 = vmatprep.subr.mxu1 %v1554_v19  ;;  %2251 = vmatpush2.msra.mxu0 %v2117_v20 }
 0x348   : > { %1965 = vmatpush2.msra.mxu1 %v1553_v32  ;;  %2252 = vmatprep.subr.mxu0 %v2116_v37 }
 0x349   : > { %2721 = vmatmul.mubr.msk.f32.vlgmr.msra.gmra.mxu1 %vm1481_vm5, %v1452_v25  ;;  %2019 = vmatprep.subr.mxu1 %v1588_v58  ;;  %v2161_v25 = vsel %vm1186_vm3, %v2153_v2, %v2160_v6  ;;  %v2173_v2 = vsel %vm1186_vm3, %v2166_v44, %v2172_v42 }
 0x34a   : > { %2253 = vmatpush2.msra.mxu0 %v2115_v52  ;;  %1972 = vmatprep.mubr.f32.mxu1 %v3544_v8  ;;  %v2170_v8 = vrot.slane %v3608_v41, 2  ;;  %v2155_v41 = vrot.slane %v3521_v30, 2 }
 0x34b   : > { %2020 = vmatpush1.msra.mxu1 %v1587_v11  ;;  %2254 = vmatprep.subr.mxu0 %v2114_v1 }
 0x34c   : > { %2255 = vmatpush2.msra.mxu0 %v2113_v13  ;;  %2021 = vmatprep.subr.mxu1 %v1586_v34 }
 0x34d   : > { %2257 = vmatmul.mubr.f32.vlgmr.msra.gmra.mxu0 %v2151_v54  ;;  %1973 = vmatmul.mubr.f32.gmra.mxu1 %v3529_v24  ;;  %v2167_v24 = vsel %vm1186_vm3, %v2160_v6, %v2166_v44  ;;  %v2378_v54 = vld [vmem:[%s3867_s6] sm:$0x3] }
 0x34e   : > { %2262 = vmatprep.mubr.f32.mxu0 %v2161_v25  ;;  %1978 = vmatprep.mubr.f32.mxu1 %v3556_v39  ;;  %v2165_v39 = vsel %vm1186_vm3, %v2158_v59, %v2164_v36 }
 0x34f   : > { %2022 = vmatpush1.msra.mxu1 %v1585_v12 }
 0x350   : > { %2309 = vmatprep.subr.mxu1 %v2148_v61 }
 0x351   : > { %2263 = vmatmul.mubr.f32.gmra.mxu0 %v2159_v28  ;;  %1979 = vmatmul.mubr.f32.gmra.mxu1 %v3553_v33  ;;  %v2171_v33 = vsel %vm1186_vm3, %v2164_v36, %v2170_v8  ;;  %v3701_v28 = vrot.slane %v2378_v54, %v1424_v62 }
 0x352   : > { %2268 = vmatprep.mubr.f32.mxu0 %v2167_v24  ;;  %1984 = vmatprep.mubr.f32.mxu1 %v3568_v31  ;;  %v2145_v31 = vld [vmem:[#allocation7 + $0x640] sm:$0xff] }
 0x355   : > { %2269 = vmatmul.mubr.f32.gmra.mxu0 %v2165_v39  ;;  %1985 = vmatmul.mubr.f32.gmra.mxu1 %v3580_v14  ;;  %v2156_v14 = vrot.slane %v3531_v49, 2 }
 0x356   : > { %2274 = vmatprep.mubr.f32.mxu0 %v2173_v2  ;;  %2055 = vmatprep.mubr.f32.mxu1 %v3059_v0 }
 0x357   : > { %v2157_v29 = vsel %vm1186_vm3, %v2155_v41, %v2156_v14  ;;  %v2163_v45 = vsel %vm1186_vm3, %v2156_v14, %v2162_v4 }
 0x359   : > { %2275 = vmatmul.mubr.f32.gmra.mxu0 %v2171_v33  ;;  %2722 = vmatmul.mubr.msk.f32.vlgmr.msra.gmra.mxu1 %vm365_vm1, %v3521_v30  ;;  %v2174_v30 = vrot.slane %v3587_v15, 2  ;;  %v3705_v33 = vrot.slane %v2378_v54, %v1428_v63 }
 0x35a   : > { %2310 = vmatpush1.msra.mxu1 %v2147_v10  ;;  %2061 = vmatprep.mubr.f32.mxu1 %v3059_v0 }
 0x35b   : > { %2311 = vmatprep.subr.mxu1 %v2146_v43 }
 0x35c   : > { %2312 = vmatpush1.msra.mxu1 %v2145_v31 }
 0x35d   : > { %2723 = vmatmul.mubr.msk.f32.gmra.mxu1 %vm365_vm1, %v3531_v49  ;;  %v2169_v49 = vsel %vm1186_vm3, %v2162_v4, %v2168_v47 }
 0x35e   : > { %2067 = vmatprep.mubr.f32.mxu1 %v3059_v0 }
 0x361   : > { %2724 = vmatmul.mubr.msk.f32.gmra.mxu1 %vm365_vm1, %v3547_v17  ;;  %v2175_v17 = vsel %vm1186_vm3, %v2168_v47, %v2174_v30 }
 0x362   : > { %2073 = vmatprep.mubr.f32.mxu1 %v3059_v0 }
 0x365   : > { %2725 = vmatmul.mubr.msk.f32.gmra.mxu1 %vm365_vm1, %v3564_v50 }
 0x366   : > { %2345 = vmatprep.mubr.f32.mxu1 %v3059_v0 }
 0x369   : > { %2726 = vmatmul.mubr.msk.f32.vlgmr.msra.gmra.mxu1 %vm365_vm1, %v2157_v29 }
 0x36a   : > { %2351 = vmatprep.mubr.f32.mxu1 %v3059_v0 }
 0x36d   : > { %2727 = vmatmul.mubr.msk.f32.gmra.mxu1 %vm365_vm1, %v2163_v45 }
 0x36e   : > { %2357 = vmatprep.mubr.f32.mxu1 %v3059_v0 }
 0x371   : > { %2728 = vmatmul.mubr.msk.f32.gmra.mxu1 %vm365_vm1, %v2169_v49 }
 0x372   : > { %2363 = vmatprep.mubr.f32.mxu1 %v3059_v0 }
 0x375   : > { %2729 = vmatmul.mubr.msk.f32.gmra.mxu1 %vm365_vm1, %v2175_v17 }
 0x3c2   : > { %v1871_v22 = vpop.f32.mrf.mxu1 }
 0x3c4   : > { %v1873_v50 = vpop.f32.mrf.mxu1 }
 0x3c6   : > { %v1782_v35 = vpop.f32.mrf.mxu0 }
 0x3c7   : > { %v1877_v46 = vpop.f32.mrf.mxu1  ;;  %v1872_v38 = vadd.f32 %v1871_v22, %v1782_v35 }
 0x3c8   : > { %v1784_v23 = vpop.f32.mrf.mxu0 }
 0x3c9   : > { %v1879_v53 = vpop.f32.mrf.mxu1  ;;  %v1874_v25 = vadd.f32 %v1873_v50, %v1784_v23 }
 0x3cb   : > { %v1788_v15 = vpop.f32.mrf.mxu0 }
 0x3cc   : > { %v1878_v36 = vadd.f32 %v1877_v46, %v1788_v15 }
 0x3cd   : > { %v1883_v26 = vpop.f32.mrf.mxu1  ;;  %v1790_v56 = vpop.f32.mrf.mxu0 }
 0x3ce   : > { %v1880_v39 = vadd.f32 %v1879_v53, %v1790_v56 }
 0x3cf   : > { %v1885_v27 = vpop.f32.mrf.mxu1 }
 0x3d1   : > { %v1794_v3 = vpop.f32.mrf.mxu0 }
 0x3d2   : > { %v1884_v4 = vadd.f32 %v1883_v26, %v1794_v3 }
 0x3d3   : > { %v1796_v51 = vpop.f32.mrf.mxu0 }
 0x3d4   : > { %v3683_v48 = vpop.f32.mrf.mxu1  ;;  %v1886_v17 = vadd.f32 %v1885_v27, %v1796_v51 }
 0x3d6   : > { %v3685_v57 = vpop.f32.mrf.mxu1 }
 0x3d9   : > { %v1800_v18 = vpop.f32.mrf.mxu0 }
 0x3da   : > { %v1890_v26 = vadd.f32 %v3683_v48, %v1800_v18 }
 0x3db   : > { %v1802_v20 = vpop.f32.mrf.mxu0 }
 0x3dc   : > { %v1892_v48 = vadd.f32 %v3685_v57, %v1802_v20 }
 0x409   : > { %v1968_v60 = vpop.f32.mrf.mxu1 }
 0x40a   : > { %v1969_v44 = vadd.f32 %v1968_v60, %v1872_v38 }
 0x40b   : > { %v1970_v0 = vpop.f32.mrf.mxu1 }
 0x40c   : > { %v1971_v42 = vadd.f32 %v1970_v0, %v1874_v25 }
 0x40d   : > { %v1974_v7 = vpop.f32.mrf.mxu1  ;;  %v2258_v37 = vpop.f32.mrf.mxu0 }
 0x40e   : > { %v1975_v43 = vadd.f32 %v1974_v7, %v1878_v36 }
 0x40f   : > { %v1976_v5 = vpop.f32.mrf.mxu1  ;;  %v2260_v9 = vpop.f32.mrf.mxu0 }
 0x410   : > { %v1977_v62 = vadd.f32 %v1976_v5, %v1880_v39 }
 0x411   : > { %v1980_v16 = vpop.f32.mrf.mxu1  ;;  %v2264_v13 = vpop.f32.mrf.mxu0 }
 0x412   : > { %v1981_v22 = vadd.f32 %v1980_v16, %v1884_v4 }
 0x413   : > { %v1982_v21 = vpop.f32.mrf.mxu1  ;;  %v2266_v59 = vpop.f32.mrf.mxu0 }
 0x414   : > { %v1983_v15 = vadd.f32 %v1982_v21, %v1886_v17 }
 0x415   : > { %v3687_v40 = vpop.f32.mrf.mxu1  ;;  %v2270_v2 = vpop.f32.mrf.mxu0 }
 0x416   : > { %v1987_v5 = vadd.f32 %v3687_v40, %v1890_v26 }
 0x417   : > { %v3689_v19 = vpop.f32.mrf.mxu1  ;;  %v2272_v50 = vpop.f32.mrf.mxu0 }
 0x419   : > { %v2057_v32 = vpop.f32.mrf.mxu1  ;;  %v2276_v51 = vpop.f32.mrf.mxu0 }
 0x41a   : > { %v2058_v24 = vadd.f32 %v2057_v32, %v1969_v44 }
 0x41b   : > { %v2059_v58 = vpop.f32.mrf.mxu1 }
 0x41c   : > { %v2060_v31 = vadd.f32 %v2059_v58, %v1971_v42 }
 0x41d   : > { %v2063_v52 = vpop.f32.mrf.mxu1 }
 0x41e   : > { %v2064_v47 = vadd.f32 %v2063_v52, %v1975_v43  ;;  %v1989_v52 = vadd.f32 %v3689_v19, %v1892_v48 }
 0x41f   : > { %v2065_v11 = vpop.f32.mrf.mxu1 }
 0x420   : > { %v2066_v55 = vadd.f32 %v2065_v11, %v1977_v62 }
 0x421   : > { %v2069_v1 = vpop.f32.mrf.mxu1 }
 0x422   : > { %v2070_v56 = vadd.f32 %v2069_v1, %v1981_v22 }
 0x423   : > { %v2071_v6 = vpop.f32.mrf.mxu1 }
 0x424   : > { %v2072_v16 = vadd.f32 %v2071_v6, %v1983_v15 }
 0x425   : > { %v3691_v34 = vpop.f32.mrf.mxu1 }
 0x427   : > { %v3696_v12 = vpop.f32.mrf.mxu1 }
 0x428   : > { %v2078_v19 = vadd.f32 %v3696_v12, %v1989_v52 }
 0x429   : > { %v2347_v61 = vpop.f32.mrf.mxu1 }
 0x42a   : > { %v2348_v8 = vadd.f32 %v2347_v61, %v2258_v37 }
 0x42b   : > { %v2349_v10 = vpop.f32.mrf.mxu1 }
 0x42c   : > { %v2370_v14 = vadd.f32 %v2348_v8, %v2058_v24  ;;  %v2350_v41 = vadd.f32 %v2349_v10, %v2260_v9  ;;  %v2076_v9 = vadd.f32 %v3691_v34, %v1987_v5 }
 0x42d   : > { %v2353_v29 = vpop.f32.mrf.mxu1 }
 0x42e   : > { %v2390_v45 = vadd.f32 %v3701_v28, %v2370_v14  ;;  %v2371_v30 = vadd.f32 %v2350_v41, %v2060_v31  ;;  %v2354_v49 = vadd.f32 %v2353_v29, %v2264_v13  ;;  %v2278_v13 = vpop.f32.mrf.mxu0 }
 0x42f   : > { %v2355_v63 = vpop.f32.mrf.mxu1 }
 0x430   : > { %v2398_v46 = vmax.f32 %v2390_v45, 0.0  ;;  %v2391_v53 = vadd.f32 %v3705_v33, %v2371_v30  ;;  %v2372_v35 = vadd.f32 %v2354_v49, %v2064_v47  ;;  %v2356_v23 = vadd.f32 %v2355_v63, %v2266_v59 }
 0x431   : > { %v2359_v60 = vpop.f32.mrf.mxu1 }
 0x432   : > { %2407 = vst.msk [vmem:[%s3712_s18] sm:$0xff] %vm2406_vm7, %v2398_v46  ;;  %v2399_v27 = vmax.f32 %v2391_v53, 0.0  ;;  %v2392_v0 = vadd.f32 %v3701_v28, %v2372_v35  ;;  %v2373_v3 = vadd.f32 %v2356_v23, %v2066_v55  ;;  %v2360_v7 = vadd.f32 %v2359_v60, %v2270_v2  ;;  %2415 = vrot.lane.b32.xlu0 %v2398_v46, %s3061_s23 }
 0x433   : > { %v2361_v21 = vpop.f32.mrf.mxu1 }
 0x434   : > { %2742 = vst.msk [vmem:[%s3712_s18 + $0x80] sm:$0xff] %vm2406_vm7, %v2399_v27  ;;  %v2400_v18 = vmax.f32 %v2392_v0, 0.0  ;;  %v2393_v32 = vadd.f32 %v3705_v33, %v2373_v3  ;;  %v2374_v37 = vadd.f32 %v2360_v7, %v2070_v56  ;;  %v2362_v58 = vadd.f32 %v2361_v21, %v2272_v50 }
 0x435   : > { %v2365_v11 = vpop.f32.mrf.mxu1 }
 0x436   : > { %2408 = vst.msk [vmem:[%s3712_s18 + $0x8] sm:$0xff] %vm2406_vm7, %v2400_v18  ;;  %v2401_v57 = vmax.f32 %v2393_v32, 0.0  ;;  %v2394_v40 = vadd.f32 %v3701_v28, %v2374_v37  ;;  %v2375_v20 = vadd.f32 %v2362_v58, %v2072_v16  ;;  %v2366_v1 = vadd.f32 %v2365_v11, %v2276_v51  ;;  %2432 = vrot.lane.b32.xlu0 %v2398_v46, %s3062_s30 }
 0x437   : > { %2434 = vrot.lane.b32.xlu1 %v2400_v18, %s3062_s30  ;;  %v2367_v6 = vpop.f32.mrf.mxu1 }
 0x438   : > { %2743 = vst.msk [vmem:[%s3712_s18 + $0x88] sm:$0xff] %vm2406_vm7, %v2401_v57  ;;  %v2402_v34 = vmax.f32 %v2394_v40, 0.0  ;;  %v2395_v38 = vadd.f32 %v3705_v33, %v2375_v20  ;;  %v2376_v54 = vadd.f32 %v2366_v1, %v2076_v9  ;;  %v2368_v59 = vadd.f32 %v2367_v6, %v2278_v13 }
 0x43a   : > { %2409 = vst.msk [vmem:[%s3712_s18 + $0x10] sm:$0xff] %vm2406_vm7, %v2402_v34  ;;  %v2403_v25 = vmax.f32 %v2395_v38, 0.0  ;;  %v2396_v44 = vadd.f32 %v3701_v28, %v2376_v54  ;;  %v2377_v61 = vadd.f32 %v2368_v59, %v2078_v19  ;;  %2449 = vrot.lane.b32.xlu0 %v2398_v46, %s3063_s10 }
 0x43b   : > { %2451 = vrot.lane.b32.xlu1 %v2400_v18, %s3063_s10 }
 0x43c   : > { %2744 = vst.msk [vmem:[%s3712_s18 + $0x90] sm:$0xff] %vm2406_vm7, %v2403_v25  ;;  %v2404_v12 = vmax.f32 %v2396_v44, 0.0  ;;  %v2397_v36 = vadd.f32 %v3705_v33, %v2377_v61 }
 0x43e   : > { %2410 = vst.msk [vmem:[%s3712_s18 + $0x18] sm:$0xff] %vm2406_vm7, %v2404_v12  ;;  %v2405_v42 = vmax.f32 %v2397_v36, 0.0  ;;  %2475 = vrot.lane.b32.xlu0 %v2399_v27, %s3061_s23 }
 0x43f   : > { %2477 = vrot.lane.b32.xlu1 %v2401_v57, %s3061_s23 }
 0x440   : > { %2745 = vst.msk [vmem:[%s3712_s18 + $0x98] sm:$0xff] %vm2406_vm7, %v2405_v42 }
 0x442   : > { %2492 = vrot.lane.b32.xlu0 %v2399_v27, %s3062_s30 }
 0x443   : > { %2494 = vrot.lane.b32.xlu1 %v2401_v57, %s3062_s30 }
 0x446   : > { %2509 = vrot.lane.b32.xlu0 %v2399_v27, %s3063_s10 }
 0x447   : > { %2511 = vrot.lane.b32.xlu1 %v2401_v57, %s3063_s10 }
 0x44a   : > { %2417 = vrot.lane.b32.xlu0 %v2400_v18, %s3061_s23 }
 0x44b   : > { %2419 = vrot.lane.b32.xlu1 %v2402_v34, %s3061_s23 }
 0x44e   : > { %2436 = vrot.lane.b32.xlu0 %v2402_v34, %s3062_s30 }
 0x44f   : > { %2421 = vrot.lane.b32.xlu1 %v2404_v12, %s3061_s23 }
 0x452   : > { %2453 = vrot.lane.b32.xlu0 %v2402_v34, %s3063_s10 }
 0x453   : > { %2438 = vrot.lane.b32.xlu1 %v2404_v12, %s3062_s30 }
 0x456   : > { %2479 = vrot.lane.b32.xlu0 %v2403_v25, %s3061_s23 }
 0x457   : > { %2455 = vrot.lane.b32.xlu1 %v2404_v12, %s3063_s10 }
 0x45a   : > { %2496 = vrot.lane.b32.xlu0 %v2403_v25, %s3062_s30 }
 0x45b   : > { %2481 = vrot.lane.b32.xlu1 %v2405_v42, %s3061_s23  ;;  %s2972_s23 = scalar_lea.vmem %s2971_s8, 8192 }
 0x45c   : > { %p2974_p6 = scmp.lt.s32.totalorder %s2972_s23, %s2966_s20 }
 0x45e   : > { %2513 = vrot.lane.b32.xlu0 %v2403_v25, %s3063_s10  ;;  %p2975_p7 = por %p2974_p6, %p2973_p3 }
 0x45f   : > { %2498 = vrot.lane.b32.xlu1 %v2405_v42, %s3062_s30 }
 0x460   : > { %p2976_p9 = pnand %p2975_p7, %p2969_p13 }
 0x463   : > { %2515 = vrot.lane.b32.xlu1 %v2405_v42, %s3063_s10 }
 0x4a4   : > { %v2416_v28 = vpop.permute.xlu0 %2415 }
 0x4a5   : > { %2730 = vst.msk [vmem:[%s3712_s18 + $0x20] sm:$0xff] %vm2406_vm7, %v2416_v28 }
 0x4a8   : > { %v2433_v24 = vpop.permute.xlu0 %2432 }
 0x4a9   : > { %v2435_v8 = vpop.permute.xlu1 %2434  ;;  %2734 = vst.msk [vmem:[%s3712_s18 + $0x40] sm:$0xff] %vm2406_vm7, %v2433_v24 }
 0x4aa   : > { %2735 = vst.msk [vmem:[%s3712_s18 + $0x48] sm:$0xff] %vm2406_vm7, %v2435_v8 }
 0x4ac   : > { %v2450_v39 = vpop.permute.xlu0 %2449 }
 0x4ad   : > { %v2452_v2 = vpop.permute.xlu1 %2451  ;;  %2738 = vst.msk [vmem:[%s3712_s18 + $0x60] sm:$0xff] %vm2406_vm7, %v2450_v39 }
 0x4ae   : > { %2739 = vst.msk [vmem:[%s3712_s18 + $0x68] sm:$0xff] %vm2406_vm7, %v2452_v2 }
 0x4b0   : > { %v2476_v10 = vpop.permute.xlu0 %2475 }
 0x4b1   : > { %v2478_v33 = vpop.permute.xlu1 %2477  ;;  %2746 = vst.msk [vmem:[%s3712_s18 + $0xa0] sm:$0xff] %vm2406_vm7, %v2476_v10 }
 0x4b2   : > { %2747 = vst.msk [vmem:[%s3712_s18 + $0xa8] sm:$0xff] %vm2406_vm7, %v2478_v33 }
 0x4b4   : > { %v2493_v43 = vpop.permute.xlu0 %2492 }
 0x4b5   : > { %v2495_v31 = vpop.permute.xlu1 %2494  ;;  %2750 = vst.msk [vmem:[%s3712_s18 + $0xc0] sm:$0xff] %vm2406_vm7, %v2493_v43 }
 0x4b6   : > { %2751 = vst.msk [vmem:[%s3712_s18 + $0xc8] sm:$0xff] %vm2406_vm7, %v2495_v31 }
 0x4b8   : > { %v2510_v14 = vpop.permute.xlu0 %2509 }
 0x4b9   : > { %v2512_v41 = vpop.permute.xlu1 %2511  ;;  %2754 = vst.msk [vmem:[%s3712_s18 + $0xe0] sm:$0xff] %vm2406_vm7, %v2510_v14 }
 0x4ba   : > { %2755 = vst.msk [vmem:[%s3712_s18 + $0xe8] sm:$0xff] %vm2406_vm7, %v2512_v41 }
 0x4bc   : > { %v2418_v4 = vpop.permute.xlu0 %2417 }
 0x4bd   : > { %v2420_v62 = vpop.permute.xlu1 %2419  ;;  %2731 = vst.msk [vmem:[%s3712_s18 + $0x28] sm:$0xff] %vm2406_vm7, %v2418_v4 }
 0x4be   : > { %2732 = vst.msk [vmem:[%s3712_s18 + $0x30] sm:$0xff] %vm2406_vm7, %v2420_v62 }
 0x4c0   : > { %v2437_v29 = vpop.permute.xlu0 %2436 }
 0x4c1   : > { %v2422_v47 = vpop.permute.xlu1 %2421  ;;  %2736 = vst.msk [vmem:[%s3712_s18 + $0x50] sm:$0xff] %vm2406_vm7, %v2437_v29 }
 0x4c2   : > { %2733 = vst.msk [vmem:[%s3712_s18 + $0x38] sm:$0xff] %vm2406_vm7, %v2422_v47 }
 0x4c4   : > { %v2454_v45 = vpop.permute.xlu0 %2453 }
 0x4c5   : > { %v2439_v30 = vpop.permute.xlu1 %2438  ;;  %2740 = vst.msk [vmem:[%s3712_s18 + $0x70] sm:$0xff] %vm2406_vm7, %v2454_v45 }
 0x4c6   : > { %2737 = vst.msk [vmem:[%s3712_s18 + $0x58] sm:$0xff] %vm2406_vm7, %v2439_v30 }
 0x4c8   : > { %v2480_v49 = vpop.permute.xlu0 %2479 }
 0x4c9   : > { %v2456_v17 = vpop.permute.xlu1 %2455  ;;  %2748 = vst.msk [vmem:[%s3712_s18 + $0xb0] sm:$0xff] %vm2406_vm7, %v2480_v49 }
 0x4ca   : > { %2741 = vst.msk [vmem:[%s3712_s18 + $0x78] sm:$0xff] %vm2406_vm7, %v2456_v17 }
 0x4cc   : > { %v2497_v22 = vpop.permute.xlu0 %2496 }
 0x4cd   : > { %v2482_v50 = vpop.permute.xlu1 %2481  ;;  %2752 = vst.msk [vmem:[%s3712_s18 + $0xd0] sm:$0xff] %vm2406_vm7, %v2497_v22 }
 0x4ce   : > { %2749 = vst.msk [vmem:[%s3712_s18 + $0xb8] sm:$0xff] %vm2406_vm7, %v2482_v50 }
 0x4d0   : > { %v2514_v55 = vpop.permute.xlu0 %2513 }
 0x4d1   : > { %v2499_v63 = vpop.permute.xlu1 %2498  ;;  %2756 = vst.msk [vmem:[%s3712_s18 + $0xf0] sm:$0xff] %vm2406_vm7, %v2514_v55 }
 0x4d2   : > { %2753 = vst.msk [vmem:[%s3712_s18 + $0xd8] sm:$0xff] %vm2406_vm7, %v2499_v63 }
 0x4d5   : > { %v2516_v46 = vpop.permute.xlu1 %2515 }
 0x4d6   : > { %2757 = vst.msk [vmem:[%s3712_s18 + $0xf8] sm:$0xff] %vm2406_vm7, %v2516_v46 }
 0x4d7   : > { %2979 = shalt.err (!%p2976_p9)
}
 0x4d8   : > { %s2980_s22 = scalar_lea.hbm %s3808_s17, 4096  ;;  %s2984_s10 = scalar_lea.hbm %s3868_s7, 8192 }
 0x4d9   : > { %p2981_p8 = scmp.ne.s32.totalorder %s3808_s17, %s2980_s22  ;;  %p2985_p2 = scmp.lt.s32.totalorder %s3808_s17, %s3868_s7 }
 0x4da   : > { %p2986_p5 = scmp.lt.s32.totalorder %s2984_s10, %s2980_s22 }
 0x4db   : > { %p2982_p12 = pnand %p2981_p8, %p3147_p4 }
 0x4dc   : > { %p2987_p0 = por %p2986_p5, %p2985_p2 }
 0x4dd   : > { %p2983_p1 = pneg %p2982_p12 }
 0x4df   : > { %p2988_p10 = pnand %p2987_p0, %p2983_p1 }
 0x4e1   : > { %2991 = shalt.err (!%p2988_p10)
}
 0x4e2   : > { %s3065_s21 = smov 128   ;;  %s3066_s20 = smov 8  }
 0x4e3   : > { %2803 = dma.vmem_to_hbm [thread:$0]  (%p3147_p4), %s3810_s15, 4096, %s3808_s17, %s3816_s27, %s3065_s21, %s3065_s21, %s3066_s20  }
 0x4e4 PF: > { %p2825_p11 = scmp.ge.s32.totalorder %s3050_s29, 2  ;;  %s2557_s16 = sand.u32 1, %s3030_s24  }
 0x4e5   : > { %p3874_p13 = scmp.ne.s32.totalorder %s3870_s13, 0  ;;  %s2558_s8 = scalar_lea.sflag [#allocation4], %s2557_s16 }
 0x4e7   : > { %p2816_p3 = pnand %p2825_p11, %p3874_p13 }
 0x4e9   : > { %p2817_p6 = pneg %p2816_p3 }
 0x4eb   : > { %3025 = dma.done.wait (%p2817_p6), %s2558_s8, 4096  }
 0x4ec   : > { %3027 = vsyncadd (%p2817_p6), %s2558_s8, 4294963200  ;;  %s22_s29 = sadd.s32 1, %s3050_s29   ;;  %s3875_s24 = smov %s3034_s25 }
 0x4ed   : > { %p19_p7 = scmp.ge.s32.totalorder %s22_s29, 4   ;;  %s3876_s25 = smov %s3038_s26 }
 0x4ee   : > { %s3877_s26 = smov %s3160_s14  ;;  %s3878_s27 = smov %s3046_s28 }
 0x4ef   : > { %s3879_s28 = smov %s3881_s9  ;;  %21 = sbr.rel (!%p19_p7) target bundleno = 6 (0x6), region = 110 }
 0x4f4   :  { %2563 = vsyncpa [#allocation3], 1 }
 0x4f5   :  { %2565 = vsyncpa [#allocation3 + $0x1], 1 }
 0x4f6   :  { %2566 = vsyncpa [#allocation6], 1 }
 0x4f7   :  { %2567 = vsyncpa [#allocation4], 1 }
 0x4f8   :  { %2569 = vsyncpa [#allocation4 + $0x1], 1 }

</bundles_post_ra>
